<compile_context>
chip_gen: v7x
topology: tpu7x:2x2x1
jax: 0.10.0
libtpu: 0.0.40
codegen_flags: <defaults>
</compile_context>

<pallas_src>
import math
import functools

import numpy as np
import jax
import jax.numpy as jnp
from jax.experimental import pallas as pl
from jax.experimental.pallas import tpu as pltpu


# ------------------------- in-kernel math helpers -------------------------

def _erf(x):
    # Abramowitz & Stegun 7.1.26 (|err| < 1.5e-7): keeps nn.GELU() exact-erf
    # semantics without relying on an erf lowering inside Mosaic.
    a1, a2, a3, a4, a5 = 0.254829592, -0.284496736, 1.421413741, -1.453152027, 1.061405429
    p = 0.3275911
    s = jnp.where(x >= 0, 1.0, -1.0)
    ax = jnp.abs(x)
    t = 1.0 / (1.0 + p * ax)
    poly = ((((a5 * t + a4) * t + a3) * t + a2) * t + a1) * t
    return s * (1.0 - poly * jnp.exp(-ax * ax))


def _gelu_exact(x):
    # nn.GELU() (erf formulation), evaluated on the fused (Bt*P, F) slab in f32.
    return 0.5 * x * (1.0 + _erf(x * (1.0 / math.sqrt(2.0))))


def _layernorm_joint(x, w, b, n_inv, eps=1e-5):
    # nn.LayerNorm([patch, embed]): statistics over BOTH trailing dims of each
    # batch element.  Two single-axis reductions (lane, then sublane), all f32.
    mu = jnp.sum(jnp.sum(x, axis=2, keepdims=True), axis=1, keepdims=True) * n_inv
    d = x - mu
    var = jnp.sum(jnp.sum(d * d, axis=2, keepdims=True), axis=1, keepdims=True) * n_inv
    return d * jax.lax.rsqrt(var + eps) * w + b


# ------------------------------ Pallas kernel ------------------------------

def vit_layer_kernel(Bt, P, E, H,
                     x_ref, ln_ref, wbig_ref, w2_ref, bias_ref, o_ref):
    """One fused encoder layer; grid = (batch_chunks, layers).

    The activation lives in the output block (VMEM-resident across the whole
    'layers' axis); per-layer packed bf16 weights stream in double-buffered so
    layer l+1's DMA overlaps layer l's compute.
    """
    layer = pl.program_id(1)
    HD = E // H
    n_inv = 1.0 / float(P * E)
    cdt = jnp.bfloat16     # MXU operand dtype (f32 accumulation everywhere)

    # Seed the resident activation from the network input at the first layer.
    # TODO(synk): on VMEM-tight v7x shapes, pass x with memory_space=pl.ANY and
    # DMA it into o_ref here instead of pinning a double-buffered VMEM block.
    @pl.when(layer == 0)
    def _():
        o_ref[...] = x_ref[...]

    x = o_ref[...].astype(jnp.float32)                       # (Bt, P, E) f32

    # ---- zero-cost ref-slices of the packed per-layer parameter blocks ----
    ln1w = ln_ref[0, 0]                                      # (P, E) f32
    ln1b = ln_ref[0, 1]
    ln2w = ln_ref[0, 2]
    ln2b = ln_ref[0, 3]
    wqkv = wbig_ref[0, :, 0:3 * E]                           # (E, 3E) bf16 (Q pre-scaled)
    wo = wbig_ref[0, :, 3 * E:4 * E]                         # (E, E)  bf16
    w1 = wbig_ref[0, :, 4 * E:6 * E]                         # (E, 2E) bf16
    w2 = w2_ref[0]                                           # (2E, E) bf16
    bqkv = bias_ref[0, :, 0:3 * E]                           # (1, 3E) f32 (Q part pre-scaled)
    bo = bias_ref[0, :, 3 * E:4 * E]
    b1 = bias_ref[0, :, 4 * E:6 * E]
    b2 = bias_ref[0, :, 6 * E:7 * E]

    # ---- LayerNorm 1 (joint over [patch, embed]) ----
    h = _layernorm_joint(x, ln1w, ln1b, n_inv)

    # ---- Multi-head self-attention ----
    # One fused (Bt*P,E)@(E,3E) QKV matmul; 1/sqrt(HD) is already folded into
    # the packed Q weights/bias, so no in-kernel score scaling is needed.
    hf = h.reshape(Bt * P, E).astype(cdt)
    qkv = jnp.dot(hf, wqkv, preferred_element_type=jnp.float32) + bqkv     # (Bt*P, 3E) f32
    qkv3 = qkv.astype(cdt).reshape(Bt, P, 3 * E)

    # Regroup heads onto a leading batch axis once (static slices + leading-axis
    # concat), then run the whole attention core as two batched einsums.
    q = jnp.concatenate([qkv3[:, :, i * HD:(i + 1) * HD] for i in range(H)], axis=0)
    k = jnp.concatenate([qkv3[:, :, E + i * HD:E + (i + 1) * HD] for i in range(H)], axis=0)
    v = jnp.concatenate([qkv3[:, :, 2 * E + i * HD:2 * E + (i + 1) * HD] for i in range(H)], axis=0)
    # q, k, v: (H*Bt, P, HD) bf16

    s = jnp.einsum('npd,nqd->npq', q, k, preferred_element_type=jnp.float32)  # (H*Bt, P, P)
    s = s - jnp.max(s, axis=-1, keepdims=True)
    e = jnp.exp(s)
    denom = jnp.sum(e, axis=-1, keepdims=True)                # (H*Bt, P, 1)
    # EUP approximate reciprocal + one Newton step (keeps ~f32 accuracy).
    r = pl.reciprocal(denom, approx=True)
    r = r * (2.0 - denom * r)
    o_h = jnp.einsum('npq,nqd->npd', e.astype(cdt), v,
                     preferred_element_type=jnp.float32)      # (H*Bt, P, HD) f32
    o_h = o_h * r                                             # deferred softmax normalization

    attn = jnp.concatenate([o_h[i * Bt:(i + 1) * Bt] for i in range(H)], axis=-1)  # (Bt,P,E)
    attn = jnp.dot(attn.reshape(Bt * P, E).astype(cdt), wo,
                   preferred_element_type=jnp.float32) + bo
    att_res = attn.reshape(Bt, P, E) + x                      # residual 1 (f32)

    # ---- LayerNorm 2 + MLP: Linear -> GELU -> (dropout=id) -> Linear -> GELU ----
    h2 = _layernorm_joint(att_res, ln2w, ln2b, n_inv).reshape(Bt * P, E).astype(cdt)
    z = jnp.dot(h2, w1, preferred_element_type=jnp.float32) + b1           # (Bt*P, 2E) f32
    z = _gelu_exact(z)
    z = jnp.dot(z.astype(cdt), w2, preferred_element_type=jnp.float32) + b2  # (Bt*P, E) f32
    z = _gelu_exact(z)
    # TODO(synk): training-mode dropout omitted (eval-mode identity).

    o_ref[...] = (z.reshape(Bt, P, E) + att_res).astype(o_ref.dtype)       # residual 2


# ------------------------------ host wrapper -------------------------------

def _pick_batch_block(B, P, E, H):
    """One batch chunk per TensorCore (nb=2 on v7x, nb=1 on v5e/v6e), shrunk
    only if the per-step activation footprint would not fit comfortably."""
    device_kind = ""
    try:
        device_kind = jax.devices()[0].device_kind.lower()
    except Exception:
        pass
    n_cores = 2 if "v7" in device_kind else 1
    target = B // n_cores if (n_cores > 1 and B % n_cores == 0) else B

    def act_bytes(bt):  # rough f32 activation + intermediate footprint per step
        return 4 * (4 * bt * P * E            # x + out blocks (double-buffered)
                    + bt * P * 3 * E          # qkv
                    + 3 * H * bt * P * P      # scores / probs
                    + 3 * bt * P * E          # attn / residual temps
                    + 2 * bt * P * 2 * E)     # MLP hidden

    budget = 24 * 1024 * 1024
    best = 1
    for d in range(1, B + 1):
        if B % d == 0 and d <= target and act_bytes(d) <= budget:
            best = d
    return best


def _vmem_limit_bytes(Bt, P, E, H):
    f32, bf16 = 4, 2
    weights = 2 * (E * 6 * E * bf16 + 2 * E * E * bf16 + 4 * P * E * f32 + 7 * E * f32)
    act_blocks = 2 * (Bt * P * E * f32) * 2
    inter = f32 * (Bt * P * 3 * E + 3 * H * Bt * P * P + 3 * Bt * P * E + 2 * Bt * P * 2 * E)
    need = weights + act_blocks + inter
    # clamp: at least 32 MiB (above the 16 MiB v5e scoped default), at most
    # 64 MiB so the request is valid on v7x's smaller physical VMEM too.
    return int(min(64 * 1024 * 1024, max(2 * need + (8 << 20), 32 * 1024 * 1024)))


def vision_transformer(x, packed, num_heads, *, batch_block=None):
    """Runs all L encoder layers in ONE pallas_call.

    grid = (batch_chunks, layers): batch axis 'parallel' (megacore friendly),
    layer axis 'arbitrary' with the activation block resident in VMEM, so there
    is no HBM round-trip of activations between layers.
    """
    B, P, E = x.shape
    H = num_heads
    ln_all, wbig_all, w2_all, bias_all = (packed["ln"], packed["wbig"],
                                          packed["w2"], packed["bias"])
    L = ln_all.shape[0]

    if batch_block is None:
        batch_block = _pick_batch_block(B, P, E, H)
    batch_block = max(1, min(batch_block, B))
    while B % batch_block != 0:          # fall back to the largest divisor
        batch_block -= 1
    nb = B // batch_block

    # TODO(synk): for production ViT (P=197) pad the patch axis to a sublane
    # multiple (8 f32 / 16 bf16) on the host so the (Bt,P,E)->(Bt*P,E) reshapes
    # land on tile boundaries; the toy shapes here are already aligned.
    kernel = functools.partial(vit_layer_kernel, batch_block, P, E, H)

    return pl.pallas_call(
        kernel,
        out_shape=jax.ShapeDtypeStruct((B, P, E), x.dtype),
        grid=(nb, L),
        in_specs=[
            pl.BlockSpec((batch_block, P, E), lambda i, l: (i, 0, 0)),   # x (constant in l)
            pl.BlockSpec((1, 4, P, E), lambda i, l: (l, 0, 0, 0)),       # LN params (f32)
            pl.BlockSpec((1, E, 6 * E), lambda i, l: (l, 0, 0)),         # [Wqkv^T|Wo^T|W1^T] bf16
            pl.BlockSpec((1, 2 * E, E), lambda i, l: (l, 0, 0)),         # W2^T bf16
            pl.BlockSpec((1, 1, 7 * E), lambda i, l: (l, 0, 0)),         # packed biases (f32)
        ],
        out_specs=pl.BlockSpec((batch_block, P, E), lambda i, l: (i, 0, 0)),
        compiler_params=pltpu.CompilerParams(
            dimension_semantics=("parallel", "arbitrary"),
            vmem_limit_bytes=_vmem_limit_bytes(batch_block, P, E, H)),
    )(x, ln_all, wbig_all, w2_all, bias_all)


# ------------------------- parameter initialization ------------------------

def init_params(key, L, P, E, H):
    """Returns (packed kernel params stacked over layers, PyTorch-shaped per-layer params).

    Matmul weights are quantized to bf16 (the kernel's HBM storage dtype); the
    reference uses the same bf16-representable values so the comparison only
    measures activation-side bf16 rounding inside the kernel.
    """
    HD = E // H
    scale = 1.0 / math.sqrt(HD)
    layer_keys = jax.random.split(key, L)
    torch_layers = []
    ln_all, wbig_all, w2_all, bias_all = [], [], [], []

    def q16(a):  # bf16-representable f32
        return a.astype(jnp.bfloat16).astype(jnp.float32)

    for lk in layer_keys:
        ks = jax.random.split(lk, 12)

        def nrm(k, shape, s=0.05):
            return (jax.random.normal(k, shape) * s).astype(jnp.float32)

        in_proj_w = q16(nrm(ks[0], (3 * E, E)))   # nn.MultiheadAttention.in_proj_weight
        in_proj_b = nrm(ks[1], (3 * E,))
        out_proj_w = q16(nrm(ks[2], (E, E)))
        out_proj_b = nrm(ks[3], (E,))
        w1 = q16(nrm(ks[4], (2 * E, E))); b1 = nrm(ks[5], (2 * E,))
        w2 = q16(nrm(ks[6], (E, 2 * E))); b2 = nrm(ks[7], (E,))
        ln1w = 1.0 + nrm(ks[8], (P, E), 0.1); ln1b = nrm(ks[9], (P, E), 0.1)
        ln2w = 1.0 + nrm(ks[10], (P, E), 0.1); ln2b = nrm(ks[11], (P, E), 0.1)

        torch_layers.append(dict(
            ln1w=ln1w, ln1b=ln1b, ln2w=ln2w, ln2b=ln2b,
            in_proj_w=in_proj_w, in_proj_b=in_proj_b,
            out_proj_w=out_proj_w, out_proj_b=out_proj_b,
            w1=w1, b1=b1, w2=w2, b2=b2))

        # Host-side packing: pre-transposed matmul weights in bf16, 1/sqrt(HD)
        # folded into the Q projection (weights + bias), biases/LN kept f32.
        wq_t = (in_proj_w[:E] * scale).T                                   # (E, E)
        wkv_t = in_proj_w[E:].T                                            # (E, 2E)
        wqkv_t = jnp.concatenate([wq_t, wkv_t], axis=1)                    # (E, 3E)
        wbig = jnp.concatenate([wqkv_t, out_proj_w.T, w1.T], axis=1)       # (E, 6E)
        bqkv = jnp.concatenate([in_proj_b[:E] * scale, in_proj_b[E:]])     # (3E,)

        ln_all.append(jnp.stack([ln1w, ln1b, ln2w, ln2b]))                 # (4, P, E) f32
        wbig_all.append(wbig.astype(jnp.bfloat16))                         # (E, 6E) bf16
        w2_all.append(w2.T.astype(jnp.bfloat16))                           # (2E, E) bf16
        bias_all.append(jnp.concatenate(
            [bqkv, out_proj_b, b1, b2]).reshape(1, 7 * E).astype(jnp.float32))  # (1, 7E)

    packed = dict(ln=jnp.stack(ln_all), wbig=jnp.stack(wbig_all),
                  w2=jnp.stack(w2_all), bias=jnp.stack(bias_all))
    return packed, torch_layers


# ----------------------------- JAX reference --------------------------------

def ref_encoder_block(x, p, H):
    B, P, E = x.shape
    HD = E // H

    def ln(v, w, b, eps=1e-5):
        mu = v.mean(axis=(-2, -1), keepdims=True)
        var = ((v - mu) ** 2).mean(axis=(-2, -1), keepdims=True)
        return (v - mu) / jnp.sqrt(var + eps) * w + b

    h = ln(x, p["ln1w"], p["ln1b"])
    qkv = h @ p["in_proj_w"].T + p["in_proj_b"]
    q, k, v = jnp.split(qkv, 3, axis=-1)
    heads = lambda t: t.reshape(B, P, H, HD).transpose(0, 2, 1, 3)
    q, k, v = heads(q), heads(k), heads(v)
    s = (q @ k.transpose(0, 1, 3, 2)) / math.sqrt(HD)
    a = jax.nn.softmax(s, axis=-1)
    o = (a @ v).transpose(0, 2, 1, 3).reshape(B, P, E)
    o = o @ p["out_proj_w"].T + p["out_proj_b"]
    att = o + x
    h2 = ln(att, p["ln2w"], p["ln2b"])
    z = jax.nn.gelu(h2 @ p["w1"].T + p["b1"], approximate=False)
    z = jax.nn.gelu(z @ p["w2"].T + p["b2"], approximate=False)
    return z + att


# ---------------------------------- main -------------------------------------

if __name__ == "__main__":
    B, P, E = 2, 8, 32           # batch, patch(seq), embed
    H = 4                        # num_heads
    L = 3                        # num_layers (small)

    key = jax.random.PRNGKey(0)
    kx, kp = jax.random.split(key)
    x = jax.random.normal(kx, (B, P, E), dtype=jnp.float32)

    packed, torch_layers = init_params(kp, L, P, E, H)

    out = jax.block_until_ready(vision_transformer(x, packed, H))

    # pure-JAX reference (faithful to the PyTorch module, f32 math on the same
    # bf16-representable weights) for correctness
    ref = x
    for tp in torch_layers:
        ref = ref_encoder_block(ref, tp, H)
    ref = jax.block_until_ready(ref)

    err = float(np.max(np.abs(np.asarray(out) - np.asarray(ref))))
    assert out.shape == (B, P, E)
    # tolerance covers bf16 MXU operands, the erf polynomial and the
    # Newton-refined EUP reciprocal
    assert np.allclose(np.asarray(out), np.asarray(ref), atol=3e-2, rtol=3e-2), \
        f"max abs err {err}"

    print("KERNEL_OK")
</pallas_src>

<mosaic_0001>
module attributes {stable_mosaic.version = 11 : i64} {
  func.func @vit_layer_kernel(%arg0: i32, %arg1: i32, %arg2: memref<2x8x32xf32, #tpu.memory_space<vmem>>, %arg3: memref<1x4x8x32xf32, #tpu.memory_space<vmem>>, %arg4: memref<1x32x192xbf16, #tpu.memory_space<vmem>>, %arg5: memref<1x64x32xbf16, #tpu.memory_space<vmem>>, %arg6: memref<1x1x224xf32, #tpu.memory_space<vmem>>, %arg7: memref<2x8x32xf32, #tpu.memory_space<vmem>>) attributes {dimension_semantics = [#tpu.dimension_semantics<parallel>, #tpu.dimension_semantics<arbitrary>], iteration_bounds = array<i64: 1, 3>, scalar_prefetch = 0 : i64, scratch_operands = 0 : i64, tpu.core_type = #tpu.core_type<tc>, window_params = [{transform_indices = @transform_0, window_bounds = array<i64: 2, 8, 32>}, {transform_indices = @transform_1, window_bounds = array<i64: 1, 4, 8, 32>}, {transform_indices = @transform_2, window_bounds = array<i64: 1, 32, 192>}, {transform_indices = @transform_3, window_bounds = array<i64: 1, 64, 32>}, {transform_indices = @transform_4, window_bounds = array<i64: 1, 1, 224>}, {transform_indices = @transform_5, window_bounds = array<i64: 2, 8, 32>}]} {
    %c0_i32 = arith.constant 0 : i32
    %0 = arith.cmpi eq, %arg1, %c0_i32 : i32
    %1 = arith.extui %0 : i1 to i32
    %c0_i32_0 = arith.constant 0 : i32
    %2 = arith.cmpi ne, %1, %c0_i32_0 : i32
    scf.if %2 {
      %c0_94 = arith.constant 0 : index
      %c0_95 = arith.constant 0 : index
      %c0_96 = arith.constant 0 : index
      %225 = vector.load %arg2[%c0_94, %c0_95, %c0_96] : memref<2x8x32xf32, #tpu.memory_space<vmem>>, vector<2x8x32xf32>
      %c0_97 = arith.constant 0 : index
      %c0_98 = arith.constant 0 : index
      %c0_99 = arith.constant 0 : index
      %226 = vector.load %arg7[%c0_97, %c0_98, %c0_99] : memref<2x8x32xf32, #tpu.memory_space<vmem>>, vector<2x8x32xf32>
      tpu.vector_store %arg7[%c0_97, %c0_98, %c0_99], %225 {strides = array<i32>} : memref<2x8x32xf32, #tpu.memory_space<vmem>>, vector<2x8x32xf32>,
    } else {
    }
    %c0 = arith.constant 0 : index
    %c0_1 = arith.constant 0 : index
    %c0_2 = arith.constant 0 : index
    %3 = vector.load %arg7[%c0, %c0_1, %c0_2] : memref<2x8x32xf32, #tpu.memory_space<vmem>>, vector<2x8x32xf32>
    %c0_3 = arith.constant 0 : index
    %c0_4 = arith.constant 0 : index
    %c0_5 = arith.constant 0 : index
    %c0_6 = arith.constant 0 : index
    %4 = vector.load %arg3[%c0_3, %c0_4, %c0_5, %c0_6] : memref<1x4x8x32xf32, #tpu.memory_space<vmem>>, vector<1x1x8x32xf32>
    %5 = vector.shape_cast %4 : vector<1x1x8x32xf32> to vector<8x32xf32>
    %c0_7 = arith.constant 0 : index
    %c1 = arith.constant 1 : index
    %c0_8 = arith.constant 0 : index
    %c0_9 = arith.constant 0 : index
    %6 = vector.load %arg3[%c0_7, %c1, %c0_8, %c0_9] : memref<1x4x8x32xf32, #tpu.memory_space<vmem>>, vector<1x1x8x32xf32>
    %7 = vector.shape_cast %6 : vector<1x1x8x32xf32> to vector<8x32xf32>
    %c0_10 = arith.constant 0 : index
    %c2 = arith.constant 2 : index
    %c0_11 = arith.constant 0 : index
    %c0_12 = arith.constant 0 : index
    %8 = vector.load %arg3[%c0_10, %c2, %c0_11, %c0_12] : memref<1x4x8x32xf32, #tpu.memory_space<vmem>>, vector<1x1x8x32xf32>
    %9 = vector.shape_cast %8 : vector<1x1x8x32xf32> to vector<8x32xf32>
    %c0_13 = arith.constant 0 : index
    %c3 = arith.constant 3 : index
    %c0_14 = arith.constant 0 : index
    %c0_15 = arith.constant 0 : index
    %10 = vector.load %arg3[%c0_13, %c3, %c0_14, %c0_15] : memref<1x4x8x32xf32, #tpu.memory_space<vmem>>, vector<1x1x8x32xf32>
    %11 = vector.shape_cast %10 : vector<1x1x8x32xf32> to vector<8x32xf32>
    %c0_16 = arith.constant 0 : index
    %c0_17 = arith.constant 0 : index
    %c0_18 = arith.constant 0 : index
    %12 = vector.load %arg4[%c0_16, %c0_17, %c0_18] : memref<1x32x192xbf16, #tpu.memory_space<vmem>>, vector<1x32x96xbf16>
    %13 = vector.shape_cast %12 : vector<1x32x96xbf16> to vector<32x96xbf16>
    %c0_19 = arith.constant 0 : index
    %c0_20 = arith.constant 0 : index
    %c96 = arith.constant 96 : index
    %14 = vector.load %arg4[%c0_19, %c0_20, %c96] : memref<1x32x192xbf16, #tpu.memory_space<vmem>>, vector<1x32x32xbf16>
    %15 = vector.shape_cast %14 : vector<1x32x32xbf16> to vector<32x32xbf16>
    %c0_21 = arith.constant 0 : index
    %c0_22 = arith.constant 0 : index
    %c128 = arith.constant 128 : index
    %16 = vector.load %arg4[%c0_21, %c0_22, %c128] : memref<1x32x192xbf16, #tpu.memory_space<vmem>>, vector<1x32x64xbf16>
    %17 = vector.shape_cast %16 : vector<1x32x64xbf16> to vector<32x64xbf16>
    %c0_23 = arith.constant 0 : index
    %c0_24 = arith.constant 0 : index
    %c0_25 = arith.constant 0 : index
    %18 = vector.load %arg5[%c0_23, %c0_24, %c0_25] : memref<1x64x32xbf16, #tpu.memory_space<vmem>>, vector<1x64x32xbf16>
    %19 = vector.shape_cast %18 : vector<1x64x32xbf16> to vector<64x32xbf16>
    %c0_26 = arith.constant 0 : index
    %c0_27 = arith.constant 0 : index
    %c0_28 = arith.constant 0 : index
    %20 = vector.load %arg6[%c0_26, %c0_27, %c0_28] : memref<1x1x224xf32, #tpu.memory_space<vmem>>, vector<1x1x96xf32>
    %21 = vector.shape_cast %20 : vector<1x1x96xf32> to vector<1x96xf32>
    %c0_29 = arith.constant 0 : index
    %c0_30 = arith.constant 0 : index
    %c96_31 = arith.constant 96 : index
    %22 = vector.load %arg6[%c0_29, %c0_30, %c96_31] : memref<1x1x224xf32, #tpu.memory_space<vmem>>, vector<1x1x32xf32>
    %23 = vector.shape_cast %22 : vector<1x1x32xf32> to vector<1x32xf32>
    %c0_32 = arith.constant 0 : index
    %c0_33 = arith.constant 0 : index
    %c128_34 = arith.constant 128 : index
    %24 = vector.load %arg6[%c0_32, %c0_33, %c128_34] : memref<1x1x224xf32, #tpu.memory_space<vmem>>, vector<1x1x64xf32>
    %25 = vector.shape_cast %24 : vector<1x1x64xf32> to vector<1x64xf32>
    %c0_35 = arith.constant 0 : index
    %c0_36 = arith.constant 0 : index
    %c192 = arith.constant 192 : index
    %26 = vector.load %arg6[%c0_35, %c0_36, %c192] : memref<1x1x224xf32, #tpu.memory_space<vmem>>, vector<1x1x32xf32>
    %27 = vector.shape_cast %26 : vector<1x1x32xf32> to vector<1x32xf32>
    %cst = arith.constant dense<0.000000e+00> : vector<2x8xf32>
    %28 = vector.multi_reduction <add>, %3, %cst [2] : vector<2x8x32xf32> to vector<2x8xf32>
    %29 = vector.shape_cast %28 : vector<2x8xf32> to vector<2x8x1xf32>
    %cst_37 = arith.constant dense<0.000000e+00> : vector<2x1xf32>
    %30 = vector.multi_reduction <add>, %29, %cst_37 [1] : vector<2x8x1xf32> to vector<2x1xf32>
    %31 = vector.shape_cast %30 : vector<2x1xf32> to vector<2x1x1xf32>
    %cst_38 = arith.constant 3.906250e-03 : f32
    %32 = vector.broadcast %cst_38 : f32 to vector<2x1x1xf32>
    %33 = arith.mulf %31, %32 : vector<2x1x1xf32>
    %34 = vector.broadcast %33 : vector<2x1x1xf32> to vector<2x8x32xf32>
    %35 = arith.subf %3, %34 : vector<2x8x32xf32>
    %36 = arith.mulf %35, %35 : vector<2x8x32xf32>
    %cst_39 = arith.constant dense<0.000000e+00> : vector<2x8xf32>
    %37 = vector.multi_reduction <add>, %36, %cst_39 [2] : vector<2x8x32xf32> to vector<2x8xf32>
    %38 = vector.shape_cast %37 : vector<2x8xf32> to vector<2x8x1xf32>
    %cst_40 = arith.constant dense<0.000000e+00> : vector<2x1xf32>
    %39 = vector.multi_reduction <add>, %38, %cst_40 [1] : vector<2x8x1xf32> to vector<2x1xf32>
    %40 = vector.shape_cast %39 : vector<2x1xf32> to vector<2x1x1xf32>
    %cst_41 = arith.constant 3.906250e-03 : f32
    %41 = vector.broadcast %cst_41 : f32 to vector<2x1x1xf32>
    %42 = arith.mulf %40, %41 : vector<2x1x1xf32>
    %cst_42 = arith.constant 9.99999974E-6 : f32
    %43 = vector.broadcast %cst_42 : f32 to vector<2x1x1xf32>
    %44 = arith.addf %42, %43 : vector<2x1x1xf32>
    %45 = math.rsqrt %44 : vector<2x1x1xf32>
    %46 = vector.broadcast %45 : vector<2x1x1xf32> to vector<2x8x32xf32>
    %47 = arith.mulf %35, %46 : vector<2x8x32xf32>
    %48 = vector.shape_cast %5 : vector<8x32xf32> to vector<1x8x32xf32>
    %49 = vector.broadcast %48 : vector<1x8x32xf32> to vector<2x8x32xf32>
    %50 = arith.mulf %47, %49 : vector<2x8x32xf32>
    %51 = vector.shape_cast %7 : vector<8x32xf32> to vector<1x8x32xf32>
    %52 = vector.broadcast %51 : vector<1x8x32xf32> to vector<2x8x32xf32>
    %53 = arith.addf %50, %52 : vector<2x8x32xf32>
    %54 = vector.shape_cast %53 : vector<2x8x32xf32> to vector<16x32xf32>
    %55 = arith.truncf %54 : vector<16x32xf32> to vector<16x32xbf16>
    %cst_43 = arith.constant dense<0.000000e+00> : vector<16x96xf32>
    %56 = tpu.matmul %55, %13, %cst_43 {dimension_numbers = #tpu.dot_dimension_numbers<[1], [0], [0], [1], [0, 0, 1, 1], [], []>} : vector<16x32xbf16>, vector<32x96xbf16>, vector<16x96xf32> -> vector<16x96xf32>
    %57 = vector.broadcast %21 : vector<1x96xf32> to vector<16x96xf32>
    %58 = arith.addf %56, %57 : vector<16x96xf32>
    %59 = arith.truncf %58 : vector<16x96xf32> to vector<16x96xbf16>
    %60 = vector.shape_cast %59 : vector<16x96xbf16> to vector<2x8x96xbf16>
    %61 = vector.extract_strided_slice %60 {offsets = [0, 0, 0], sizes = [2, 8, 8], strides = [1, 1, 1]} : vector<2x8x96xbf16> to vector<2x8x8xbf16>
    %62 = vector.extract_strided_slice %60 {offsets = [0, 0, 8], sizes = [2, 8, 8], strides = [1, 1, 1]} : vector<2x8x96xbf16> to vector<2x8x8xbf16>
    %63 = vector.extract_strided_slice %60 {offsets = [0, 0, 16], sizes = [2, 8, 8], strides = [1, 1, 1]} : vector<2x8x96xbf16> to vector<2x8x8xbf16>
    %64 = vector.extract_strided_slice %60 {offsets = [0, 0, 24], sizes = [2, 8, 8], strides = [1, 1, 1]} : vector<2x8x96xbf16> to vector<2x8x8xbf16>
    %65 = tpu.concatenate %61, %62, %63, %64 in 0 : vector<2x8x8xbf16>, vector<2x8x8xbf16>, vector<2x8x8xbf16>, vector<2x8x8xbf16> -> vector<8x8x8xbf16>
    %66 = vector.extract_strided_slice %60 {offsets = [0, 0, 32], sizes = [2, 8, 8], strides = [1, 1, 1]} : vector<2x8x96xbf16> to vector<2x8x8xbf16>
    %67 = vector.extract_strided_slice %60 {offsets = [0, 0, 40], sizes = [2, 8, 8], strides = [1, 1, 1]} : vector<2x8x96xbf16> to vector<2x8x8xbf16>
    %68 = vector.extract_strided_slice %60 {offsets = [0, 0, 48], sizes = [2, 8, 8], strides = [1, 1, 1]} : vector<2x8x96xbf16> to vector<2x8x8xbf16>
    %69 = vector.extract_strided_slice %60 {offsets = [0, 0, 56], sizes = [2, 8, 8], strides = [1, 1, 1]} : vector<2x8x96xbf16> to vector<2x8x8xbf16>
    %70 = tpu.concatenate %66, %67, %68, %69 in 0 : vector<2x8x8xbf16>, vector<2x8x8xbf16>, vector<2x8x8xbf16>, vector<2x8x8xbf16> -> vector<8x8x8xbf16>
    %71 = vector.extract_strided_slice %60 {offsets = [0, 0, 64], sizes = [2, 8, 8], strides = [1, 1, 1]} : vector<2x8x96xbf16> to vector<2x8x8xbf16>
    %72 = vector.extract_strided_slice %60 {offsets = [0, 0, 72], sizes = [2, 8, 8], strides = [1, 1, 1]} : vector<2x8x96xbf16> to vector<2x8x8xbf16>
    %73 = vector.extract_strided_slice %60 {offsets = [0, 0, 80], sizes = [2, 8, 8], strides = [1, 1, 1]} : vector<2x8x96xbf16> to vector<2x8x8xbf16>
    %74 = vector.extract_strided_slice %60 {offsets = [0, 0, 88], sizes = [2, 8, 8], strides = [1, 1, 1]} : vector<2x8x96xbf16> to vector<2x8x8xbf16>
    %75 = tpu.concatenate %71, %72, %73, %74 in 0 : vector<2x8x8xbf16>, vector<2x8x8xbf16>, vector<2x8x8xbf16>, vector<2x8x8xbf16> -> vector<8x8x8xbf16>
    "tpu.trace_start"() <{level = 10 : i32, message = "npd,nqd->npq"}> : () -> ()
    %cst_44 = arith.constant dense<0.000000e+00> : vector<8x8x8xf32>
    %76 = tpu.matmul %65, %70, %cst_44 {dimension_numbers = #tpu.dot_dimension_numbers<[2], [2], [1], [1], [0, 0, 0, 1, 1, 1], [0], [0]>} : vector<8x8x8xbf16>, vector<8x8x8xbf16>, vector<8x8x8xf32> -> vector<8x8x8xf32>
    "tpu.trace_stop"() : () -> ()
    %cst_45 = arith.constant dense<0xFF800000> : vector<8x8xf32>
    %77 = vector.multi_reduction <maximumf>, %76, %cst_45 [2] : vector<8x8x8xf32> to vector<8x8xf32>
    %78 = vector.shape_cast %77 : vector<8x8xf32> to vector<8x8x1xf32>
    %79 = vector.broadcast %78 : vector<8x8x1xf32> to vector<8x8x8xf32>
    %80 = arith.subf %76, %79 : vector<8x8x8xf32>
    %81 = math.exp %80 : vector<8x8x8xf32>
    %cst_46 = arith.constant dense<0.000000e+00> : vector<8x8xf32>
    %82 = vector.multi_reduction <add>, %81, %cst_46 [2] : vector<8x8x8xf32> to vector<8x8xf32>
    %83 = vector.shape_cast %82 : vector<8x8xf32> to vector<8x8x1xf32>
    %84 = tpu.reciprocal %83 {approx = true} : vector<8x8x1xf32> -> vector<8x8x1xf32>
    %85 = arith.mulf %83, %84 : vector<8x8x1xf32>
    %cst_47 = arith.constant 2.000000e+00 : f32
    %86 = vector.broadcast %cst_47 : f32 to vector<8x8x1xf32>
    %87 = arith.subf %86, %85 : vector<8x8x1xf32>
    %88 = arith.mulf %84, %87 : vector<8x8x1xf32>
    %89 = arith.truncf %81 : vector<8x8x8xf32> to vector<8x8x8xbf16>
    "tpu.trace_start"() <{level = 10 : i32, message = "npq,nqd->npd"}> : () -> ()
    %cst_48 = arith.constant dense<0.000000e+00> : vector<8x8x8xf32>
    %90 = tpu.matmul %89, %75, %cst_48 {dimension_numbers = #tpu.dot_dimension_numbers<[2], [1], [1], [2], [0, 0, 0, 1, 1, 2], [0], [0]>} : vector<8x8x8xbf16>, vector<8x8x8xbf16>, vector<8x8x8xf32> -> vector<8x8x8xf32>
    "tpu.trace_stop"() : () -> ()
    %91 = vector.broadcast %88 : vector<8x8x1xf32> to vector<8x8x8xf32>
    %92 = arith.mulf %90, %91 : vector<8x8x8xf32>
    %93 = vector.extract_strided_slice %92 {offsets = [0, 0, 0], sizes = [2, 8, 8], strides = [1, 1, 1]} : vector<8x8x8xf32> to vector<2x8x8xf32>
    %94 = vector.extract_strided_slice %92 {offsets = [2, 0, 0], sizes = [2, 8, 8], strides = [1, 1, 1]} : vector<8x8x8xf32> to vector<2x8x8xf32>
    %95 = vector.extract_strided_slice %92 {offsets = [4, 0, 0], sizes = [2, 8, 8], strides = [1, 1, 1]} : vector<8x8x8xf32> to vector<2x8x8xf32>
    %96 = vector.extract_strided_slice %92 {offsets = [6, 0, 0], sizes = [2, 8, 8], strides = [1, 1, 1]} : vector<8x8x8xf32> to vector<2x8x8xf32>
    %97 = tpu.concatenate %93, %94, %95, %96 in 2 : vector<2x8x8xf32>, vector<2x8x8xf32>, vector<2x8x8xf32>, vector<2x8x8xf32> -> vector<2x8x32xf32>
    %98 = vector.shape_cast %97 : vector<2x8x32xf32> to vector<16x32xf32>
    %99 = arith.truncf %98 : vector<16x32xf32> to vector<16x32xbf16>
    %cst_49 = arith.constant dense<0.000000e+00> : vector<16x32xf32>
    %100 = tpu.matmul %99, %15, %cst_49 {dimension_numbers = #tpu.dot_dimension_numbers<[1], [0], [0], [1], [0, 0, 1, 1], [], []>} : vector<16x32xbf16>, vector<32x32xbf16>, vector<16x32xf32> -> vector<16x32xf32>
    %101 = vector.broadcast %23 : vector<1x32xf32> to vector<16x32xf32>
    %102 = arith.addf %100, %101 : vector<16x32xf32>
    %103 = vector.shape_cast %102 : vector<16x32xf32> to vector<2x8x32xf32>
    %104 = arith.addf %103, %3 : vector<2x8x32xf32>
    %cst_50 = arith.constant dense<0.000000e+00> : vector<2x8xf32>
    %105 = vector.multi_reduction <add>, %104, %cst_50 [2] : vector<2x8x32xf32> to vector<2x8xf32>
    %106 = vector.shape_cast %105 : vector<2x8xf32> to vector<2x8x1xf32>
    %cst_51 = arith.constant dense<0.000000e+00> : vector<2x1xf32>
    %107 = vector.multi_reduction <add>, %106, %cst_51 [1] : vector<2x8x1xf32> to vector<2x1xf32>
    %108 = vector.shape_cast %107 : vector<2x1xf32> to vector<2x1x1xf32>
    %cst_52 = arith.constant 3.906250e-03 : f32
    %109 = vector.broadcast %cst_52 : f32 to vector<2x1x1xf32>
    %110 = arith.mulf %108, %109 : vector<2x1x1xf32>
    %111 = vector.broadcast %110 : vector<2x1x1xf32> to vector<2x8x32xf32>
    %112 = arith.subf %104, %111 : vector<2x8x32xf32>
    %113 = arith.mulf %112, %112 : vector<2x8x32xf32>
    %cst_53 = arith.constant dense<0.000000e+00> : vector<2x8xf32>
    %114 = vector.multi_reduction <add>, %113, %cst_53 [2] : vector<2x8x32xf32> to vector<2x8xf32>
    %115 = vector.shape_cast %114 : vector<2x8xf32> to vector<2x8x1xf32>
    %cst_54 = arith.constant dense<0.000000e+00> : vector<2x1xf32>
    %116 = vector.multi_reduction <add>, %115, %cst_54 [1] : vector<2x8x1xf32> to vector<2x1xf32>
    %117 = vector.shape_cast %116 : vector<2x1xf32> to vector<2x1x1xf32>
    %cst_55 = arith.constant 3.906250e-03 : f32
    %118 = vector.broadcast %cst_55 : f32 to vector<2x1x1xf32>
    %119 = arith.mulf %117, %118 : vector<2x1x1xf32>
    %cst_56 = arith.constant 9.99999974E-6 : f32
    %120 = vector.broadcast %cst_56 : f32 to vector<2x1x1xf32>
    %121 = arith.addf %119, %120 : vector<2x1x1xf32>
    %122 = math.rsqrt %121 : vector<2x1x1xf32>
    %123 = vector.broadcast %122 : vector<2x1x1xf32> to vector<2x8x32xf32>
    %124 = arith.mulf %112, %123 : vector<2x8x32xf32>
    %125 = vector.shape_cast %9 : vector<8x32xf32> to vector<1x8x32xf32>
    %126 = vector.broadcast %125 : vector<1x8x32xf32> to vector<2x8x32xf32>
    %127 = arith.mulf %124, %126 : vector<2x8x32xf32>
    %128 = vector.shape_cast %11 : vector<8x32xf32> to vector<1x8x32xf32>
    %129 = vector.broadcast %128 : vector<1x8x32xf32> to vector<2x8x32xf32>
    %130 = arith.addf %127, %129 : vector<2x8x32xf32>
    %131 = vector.shape_cast %130 : vector<2x8x32xf32> to vector<16x32xf32>
    %132 = arith.truncf %131 : vector<16x32xf32> to vector<16x32xbf16>
    %cst_57 = arith.constant dense<0.000000e+00> : vector<16x64xf32>
    %133 = tpu.matmul %132, %17, %cst_57 {dimension_numbers = #tpu.dot_dimension_numbers<[1], [0], [0], [1], [0, 0, 1, 1], [], []>} : vector<16x32xbf16>, vector<32x64xbf16>, vector<16x64xf32> -> vector<16x64xf32>
    %134 = vector.broadcast %25 : vector<1x64xf32> to vector<16x64xf32>
    %135 = arith.addf %133, %134 : vector<16x64xf32>
    %cst_58 = arith.constant 5.000000e-01 : f32
    %136 = vector.broadcast %cst_58 : f32 to vector<16x64xf32>
    %137 = arith.mulf %136, %135 : vector<16x64xf32>
    %cst_59 = arith.constant 0.707106769 : f32
    %138 = vector.broadcast %cst_59 : f32 to vector<16x64xf32>
    %139 = arith.mulf %135, %138 : vector<16x64xf32>
    %cst_60 = arith.constant 0.000000e+00 : f32
    %140 = vector.broadcast %cst_60 : f32 to vector<16x64xf32>
    %141 = arith.cmpf oge, %139, %140 : vector<16x64xf32>
    %cst_61 = arith.constant 1.000000e+00 : f32
    %cst_62 = arith.constant -1.000000e+00 : f32
    %142 = vector.broadcast %cst_61 : f32 to vector<16x64xf32>
    %143 = vector.broadcast %cst_62 : f32 to vector<16x64xf32>
    %144 = arith.select %141, %142, %143 : vector<16x64xi1>, vector<16x64xf32>
    %145 = math.absf %139 : vector<16x64xf32>
    %cst_63 = arith.constant 0.327591091 : f32
    %146 = vector.broadcast %cst_63 : f32 to vector<16x64xf32>
    %147 = arith.mulf %146, %145 : vector<16x64xf32>
    %cst_64 = arith.constant 1.000000e+00 : f32
    %148 = vector.broadcast %cst_64 : f32 to vector<16x64xf32>
    %149 = arith.addf %148, %147 : vector<16x64xf32>
    %cst_65 = arith.constant 1.000000e+00 : f32
    %150 = vector.broadcast %cst_65 : f32 to vector<16x64xf32>
    %151 = arith.divf %150, %149 : vector<16x64xf32>
    %cst_66 = arith.constant 1.06140542 : f32
    %152 = vector.broadcast %cst_66 : f32 to vector<16x64xf32>
    %153 = arith.mulf %152, %151 : vector<16x64xf32>
    %cst_67 = arith.constant -1.45315206 : f32
    %154 = vector.broadcast %cst_67 : f32 to vector<16x64xf32>
    %155 = arith.addf %153, %154 : vector<16x64xf32>
    %156 = arith.mulf %155, %151 : vector<16x64xf32>
    %cst_68 = arith.constant 1.42141378 : f32
    %157 = vector.broadcast %cst_68 : f32 to vector<16x64xf32>
    %158 = arith.addf %156, %157 : vector<16x64xf32>
    %159 = arith.mulf %158, %151 : vector<16x64xf32>
    %cst_69 = arith.constant -0.284496725 : f32
    %160 = vector.broadcast %cst_69 : f32 to vector<16x64xf32>
    %161 = arith.addf %159, %160 : vector<16x64xf32>
    %162 = arith.mulf %161, %151 : vector<16x64xf32>
    %cst_70 = arith.constant 0.254829586 : f32
    %163 = vector.broadcast %cst_70 : f32 to vector<16x64xf32>
    %164 = arith.addf %162, %163 : vector<16x64xf32>
    %165 = arith.mulf %164, %151 : vector<16x64xf32>
    %cst_71 = arith.constant 0.000000e+00 : f32
    %166 = vector.broadcast %cst_71 : f32 to vector<16x64xf32>
    %167 = arith.subf %166, %145 : vector<16x64xf32>
    %168 = arith.mulf %167, %145 : vector<16x64xf32>
    %169 = math.exp %168 : vector<16x64xf32>
    %170 = arith.mulf %165, %169 : vector<16x64xf32>
    %cst_72 = arith.constant 1.000000e+00 : f32
    %171 = vector.broadcast %cst_72 : f32 to vector<16x64xf32>
    %172 = arith.subf %171, %170 : vector<16x64xf32>
    %173 = arith.mulf %144, %172 : vector<16x64xf32>
    %cst_73 = arith.constant 1.000000e+00 : f32
    %174 = vector.broadcast %cst_73 : f32 to vector<16x64xf32>
    %175 = arith.addf %174, %173 : vector<16x64xf32>
    %176 = arith.mulf %137, %175 : vector<16x64xf32>
    %177 = arith.truncf %176 : vector<16x64xf32> to vector<16x64xbf16>
    %cst_74 = arith.constant dense<0.000000e+00> : vector<16x32xf32>
    %178 = tpu.matmul %177, %19, %cst_74 {dimension_numbers = #tpu.dot_dimension_numbers<[1], [0], [0], [1], [0, 0, 1, 1], [], []>} : vector<16x64xbf16>, vector<64x32xbf16>, vector<16x32xf32> -> vector<16x32xf32>
    %179 = vector.broadcast %27 : vector<1x32xf32> to vector<16x32xf32>
    %180 = arith.addf %178, %179 : vector<16x32xf32>
    %cst_75 = arith.constant 5.000000e-01 : f32
    %181 = vector.broadcast %cst_75 : f32 to vector<16x32xf32>
    %182 = arith.mulf %181, %180 : vector<16x32xf32>
    %cst_76 = arith.constant 0.707106769 : f32
    %183 = vector.broadcast %cst_76 : f32 to vector<16x32xf32>
    %184 = arith.mulf %180, %183 : vector<16x32xf32>
    %cst_77 = arith.constant 0.000000e+00 : f32
    %185 = vector.broadcast %cst_77 : f32 to vector<16x32xf32>
    %186 = arith.cmpf oge, %184, %185 : vector<16x32xf32>
    %cst_78 = arith.constant 1.000000e+00 : f32
    %cst_79 = arith.constant -1.000000e+00 : f32
    %187 = vector.broadcast %cst_78 : f32 to vector<16x32xf32>
    %188 = vector.broadcast %cst_79 : f32 to vector<16x32xf32>
    %189 = arith.select %186, %187, %188 : vector<16x32xi1>, vector<16x32xf32>
    %190 = math.absf %184 : vector<16x32xf32>
    %cst_80 = arith.constant 0.327591091 : f32
    %191 = vector.broadcast %cst_80 : f32 to vector<16x32xf32>
    %192 = arith.mulf %191, %190 : vector<16x32xf32>
    %cst_81 = arith.constant 1.000000e+00 : f32
    %193 = vector.broadcast %cst_81 : f32 to vector<16x32xf32>
    %194 = arith.addf %193, %192 : vector<16x32xf32>
    %cst_82 = arith.constant 1.000000e+00 : f32
    %195 = vector.broadcast %cst_82 : f32 to vector<16x32xf32>
    %196 = arith.divf %195, %194 : vector<16x32xf32>
    %cst_83 = arith.constant 1.06140542 : f32
    %197 = vector.broadcast %cst_83 : f32 to vector<16x32xf32>
    %198 = arith.mulf %197, %196 : vector<16x32xf32>
    %cst_84 = arith.constant -1.45315206 : f32
    %199 = vector.broadcast %cst_84 : f32 to vector<16x32xf32>
    %200 = arith.addf %198, %199 : vector<16x32xf32>
    %201 = arith.mulf %200, %196 : vector<16x32xf32>
    %cst_85 = arith.constant 1.42141378 : f32
    %202 = vector.broadcast %cst_85 : f32 to vector<16x32xf32>
    %203 = arith.addf %201, %202 : vector<16x32xf32>
    %204 = arith.mulf %203, %196 : vector<16x32xf32>
    %cst_86 = arith.constant -0.284496725 : f32
    %205 = vector.broadcast %cst_86 : f32 to vector<16x32xf32>
    %206 = arith.addf %204, %205 : vector<16x32xf32>
    %207 = arith.mulf %206, %196 : vector<16x32xf32>
    %cst_87 = arith.constant 0.254829586 : f32
    %208 = vector.broadcast %cst_87 : f32 to vector<16x32xf32>
    %209 = arith.addf %207, %208 : vector<16x32xf32>
    %210 = arith.mulf %209, %196 : vector<16x32xf32>
    %cst_88 = arith.constant 0.000000e+00 : f32
    %211 = vector.broadcast %cst_88 : f32 to vector<16x32xf32>
    %212 = arith.subf %211, %190 : vector<16x32xf32>
    %213 = arith.mulf %212, %190 : vector<16x32xf32>
    %214 = math.exp %213 : vector<16x32xf32>
    %215 = arith.mulf %210, %214 : vector<16x32xf32>
    %cst_89 = arith.constant 1.000000e+00 : f32
    %216 = vector.broadcast %cst_89 : f32 to vector<16x32xf32>
    %217 = arith.subf %216, %215 : vector<16x32xf32>
    %218 = arith.mulf %189, %217 : vector<16x32xf32>
    %cst_90 = arith.constant 1.000000e+00 : f32
    %219 = vector.broadcast %cst_90 : f32 to vector<16x32xf32>
    %220 = arith.addf %219, %218 : vector<16x32xf32>
    %221 = arith.mulf %182, %220 : vector<16x32xf32>
    %222 = vector.shape_cast %221 : vector<16x32xf32> to vector<2x8x32xf32>
    %223 = arith.addf %222, %104 : vector<2x8x32xf32>
    %c0_91 = arith.constant 0 : index
    %c0_92 = arith.constant 0 : index
    %c0_93 = arith.constant 0 : index
    %224 = vector.load %arg7[%c0_91, %c0_92, %c0_93] : memref<2x8x32xf32, #tpu.memory_space<vmem>>, vector<2x8x32xf32>
    tpu.vector_store %arg7[%c0_91, %c0_92, %c0_93], %223 {strides = array<i32>} : memref<2x8x32xf32, #tpu.memory_space<vmem>>, vector<2x8x32xf32>,
    return
  }
  func.func @transform_0(%arg0: i32, %arg1: i32) -> (i32, i32, i32) {
    %c0_i32 = arith.constant 0 : i32
    %c0_i32_0 = arith.constant 0 : i32
    %c0_i32_1 = arith.constant 0 : i32
    return %arg0, %c0_i32, %c0_i32_0 : i32, i32, i32
  }
  func.func @transform_1(%arg0: i32, %arg1: i32) -> (i32, i32, i32, i32) {
    %c0_i32 = arith.constant 0 : i32
    %c0_i32_0 = arith.constant 0 : i32
    %c0_i32_1 = arith.constant 0 : i32
    %c0_i32_2 = arith.constant 0 : i32
    return %arg1, %c0_i32, %c0_i32_0, %c0_i32_1 : i32, i32, i32, i32
  }
  func.func @transform_2(%arg0: i32, %arg1: i32) -> (i32, i32, i32) {
    %c0_i32 = arith.constant 0 : i32
    %c0_i32_0 = arith.constant 0 : i32
    %c0_i32_1 = arith.constant 0 : i32
    return %arg1, %c0_i32, %c0_i32_0 : i32, i32, i32
  }
  func.func @transform_3(%arg0: i32, %arg1: i32) -> (i32, i32, i32) {
    %c0_i32 = arith.constant 0 : i32
    %c0_i32_0 = arith.constant 0 : i32
    %c0_i32_1 = arith.constant 0 : i32
    return %arg1, %c0_i32, %c0_i32_0 : i32, i32, i32
  }
  func.func @transform_4(%arg0: i32, %arg1: i32) -> (i32, i32, i32) {
    %c0_i32 = arith.constant 0 : i32
    %c0_i32_0 = arith.constant 0 : i32
    %c0_i32_1 = arith.constant 0 : i32
    return %arg1, %c0_i32, %c0_i32_0 : i32, i32, i32
  }
  func.func @transform_5(%arg0: i32, %arg1: i32) -> (i32, i32, i32) {
    %c0_i32 = arith.constant 0 : i32
    %c0_i32_0 = arith.constant 0 : i32
    %c0_i32_1 = arith.constant 0 : i32
    return %arg0, %c0_i32, %c0_i32_0 : i32, i32, i32
  }
}

</mosaic_0001>

<bundles_post_ra>
// kernel: tpu_custom_call.1
= control target key start
LH: loop header
LB: loop body
LE: loop exit
PB: predicated region body
PF: predicated region fallthrough
CT: control target
= control target key end

     0   :  { %10 = vsyncpa [#allocation3], 0  ;;  %s2904_s0 = inlined_call_operand.vmem [shape: f32[2,8,32], index: 0, kind: input, shape index: {}]   ;;  %s2905_s1 = inlined_call_operand.vmem [shape: f32[3,4,8,32], index: 1, kind: input, shape index: {}]   ;;  %s2906_s2 = inlined_call_operand.hbm [shape: bf16[3,32,192], index: 2, kind: input, shape index: {}]   ;;  %s2907_s3 = inlined_call_operand.vmem [shape: bf16[3,64,32], index: 3, kind: input, shape index: {}]   ;;  %s2908_s4 = inlined_call_operand.vmem [shape: f32[3,1,224], index: 4, kind: input, shape index: {}]   ;;  %s2909_s5 = inlined_call_operand.hbm [shape: f32[2,8,32], index: 5, kind: output, shape index: {}]  }
   0x1   :  { %12 = vsyncpa [#allocation3 + $0x1], 0 }
   0x2   :  { %13 = vsyncpa [#allocation4], 0  ;;  %s2475_s18 = smov 0   ;;  %s2477_s19 = smov 0  }
   0x3   :  { %s2479_s20 = smov 0   ;;  %s2481_s21 = smov 0  }
   0x4   :  { %s2483_s22 = smov 0   ;;  %s2485_s23 = smov 0  }
   0x5 LB: > { %s1917_s24 = sadd.s32 4294967295, %s2426_s23   ;;  %s28_s25 = sadd.s32 1, %s2422_s22  ;;  %s2426_s23 = sphi %s2485_s23, %s19_s23   ;;  %s2422_s22 = sphi %s2483_s22, %s2918_s22   ;;  %s2418_s21 = sphi %s2481_s21, %s2917_s21   ;;  %s2414_s20 = sphi %s2479_s20, %s2916_s20   ;;  %s2410_s19 = sphi %s2477_s19, %s2915_s19   ;;  %s2406_s18 = sphi %s2475_s18, %s2914_s18  }
   0x6   : > { %p29_p0 = scmp.ge.s32.totalorder %s28_s25, 3  ;;  %s90_s26 = sadd.s32 1, %s2414_s20 }
   0x7   : > { %p97_p1 = scmp.ne.s32.totalorder %s2414_s20, %s2410_s19  ;;  %p98_p2 = scmp.eq.s32.totalorder %s2426_s23, 0 }
   0x8   : > { %s2920_s25 = smov (%p29_p0, %s28_s25), 0  ;;  %p103_p4 = scmp.ne.s32.totalorder %s2410_s19, %s2406_s18 }
   0x9   : > { %p2511_p3 = por %p98_p2, %p97_p1  ;;  %s87_s28 = ssub.s32 %s2422_s22, %s2920_s25 }
   0xa   : > { %p104_p5 = scmp.eq.s32.totalorder %s1917_s24, 0  ;;  %p88_p6 = scmp.eq.s32.totalorder %s87_s28, 0 }
   0xb   : > { %p2170_p8 = scmp.lt.s32.totalorder %s2426_s23, 3  ;;  %s222_s6 = sand.u32 1, %s2414_s20  }
   0xc   : > { %p2520_p7 = por %p104_p5, %p103_p4  ;;  %s1977_s7 = sshll.u32 %s2422_s22, 9 }
   0xd   : > { %s2526_s30 = scalar_select %p88_p6, %s2414_s20, %s90_s26  }
   0xe   : > { %s1921_s8 = sshll.u32 %s222_s6, 5  ;;  %s2533_s11 = scalar_lea.hbm %s2906_s2, %s1977_s7 }
   0xf   : > { %s226_s12 = scalar_lea.vmem [#allocation2], %s1921_s8  ;;  %p2537_p9 = pnand %p2170_p8, %p2511_p3 }
  0x10   : > { %s233_s13 = sshll.u32 %s226_s12, 4  ;;  %s2543_s15 = scalar_lea.sflag [#allocation3], %s222_s6  ;;  %s2541_s13 = int_to_ptr.vmem [resolvable:$true] %s233_s13 }
  0x11   : > { %s2316_s16 = scalar_lea.hbm %s2533_s11, 512  ;;  %p2318_p11 = pneg %p2537_p9 }
  0x12   : > { %p2317_p10 = scmp.ne.s32.totalorder %s2533_s11, %s2316_s16  ;;  %s2321_s26 = scalar_lea.hbm %s2906_s2, 1536 }
  0x13   : > { %p2322_p0 = scmp.lt.u32.totalorder %s2533_s11, %s2906_s2  ;;  %p2323_p1 = scmp.lt.u32.totalorder %s2321_s26, %s2316_s16 }
  0x14   : > { %p2319_p12 = pnand %p2318_p11, %p2317_p10  ;;  %p2325_p3 = scmp.lt.u32.totalorder %s2316_s16, %s2533_s11 }
  0x15   : > { %p2324_p2 = por %p2323_p1, %p2322_p0 }
  0x16   : > { %p2320_p13 = pneg %p2319_p12 }
  0x17   : > { %p2326_p4 = por %p2325_p3, %p2324_p2 }
  0x19   : > { %p2327_p5 = pnand %p2326_p4, %p2320_p13 }
  0x1b   : > { %2330 = shalt.err (!%p2327_p5)
}
  0x1c   : > { %s2331_s6 = scalar_lea.vmem %s2541_s13, 512  ;;  %s2428_s7 = smov [#allocation2]  }
  0x1d   : > { %p2332_p6 = scmp.ne.s32.totalorder %s2541_s13, %s2331_s6  ;;  %s2336_s8 = sshll.u32 %s2428_s7, 4  ;;  %s2337_s8 = int_to_ptr.vmem [resolvable:$false] %s2336_s8 }
  0x1e   : > { %s2338_s9 = scalar_lea.vmem %s2337_s8, 1024  ;;  %p2339_p12 = scmp.lt.s32.totalorder %s2541_s13, %s2337_s8 }
  0x1f   : > { %p2334_p8 = pnand %p2332_p6, %p2318_p11  ;;  %p2340_p0 = scmp.lt.s32.totalorder %s2338_s9, %s2331_s6 }
  0x21   : > { %p2335_p10 = pneg %p2334_p8  ;;  %p2341_p1 = por %p2340_p0, %p2339_p12 }
  0x23   : > { %p2342_p2 = pnand %p2341_p1, %p2335_p10 }
  0x25   : > { %2345 = shalt.err (!%p2342_p2)
}
  0x26   : > { %s2429_s10 = smov 128   ;;  %s2430_s12 = smov 8  }
  0x27   : > { %2169 = dma.hbm_to_vmem [thread:$0]  (!%p2537_p9), %s2533_s11, 512, %s2541_s13, %s2543_s15, %s2429_s10, %s2429_s10, %s2430_s12  }
  0x28   : > { %p1924_p11 = scmp.ge.s32.totalorder %s2426_s23, 1  ;;  %p256_p13 = scmp.lt.s32.totalorder %s2426_s23, 4 }
  0x2a   : > { %p257_p3 = pnand %p1924_p11, %p256_p13 }
  0x2b   : > { %s262_s16 = sand.u32 (!%p257_p3), 1, %s2410_s19  }
  0x2c   : > { %260 = sbr.rel (%p257_p3) target bundleno = 2740 (0xab4), region = 40  ;;  %s1925_s17 = sshll.u32 (!%p257_p3), %s262_s16, 5 }
  0x2d   : > { %s263_s18 = scalar_lea.sflag (!%p257_p3), [#allocation3], %s262_s16  ;;  %s2574_s26 = scalar_lea.vmem (!%p257_p3), [#allocation2], %s1925_s17 }
  0x33   : > { %2397 = dma.done.wait (%p2520_p7), %s263_s18, 512  }
  0x34   : > { %2399 = vsyncadd (%p2520_p7), %s263_s18, 4294966784  ;;  %p313_p4 = scmp.lt.s32.totalorder %s2418_s21, 2  ;;  %p1931_p7 = scmp.ne.s32.totalorder %s2418_s21, 0 }
  0x35   : > { %v333_v0 = vld [vmem:[%s2904_s0] sm:$0xff] (!%p1931_p7)  ;;  %vm335_vm0 = vcmask (!%p1931_p7), 261120   ;;  %v334_v1 = vld [vmem:[%s2904_s0 + $0x8] sm:$0xff] (!%p1931_p7) }
  0x36   : > { %s314_s11 = scalar_select %p313_p4, %s2418_s21, 2 }
  0x37   : > { %332 = sbr.rel (%p1931_p7) target bundleno = 62 (0x3e), region = 48  ;;  %336 = vst.msk [vmem:[#allocation5] sm:$0xff] (!%p1931_p7), %vm335_vm0, %v333_v0  ;;  %337 = vst.msk [vmem:[#allocation5 + $0x8] sm:$0xff] (!%p1931_p7), %vm335_vm0, %v334_v1 }
  0x38   : > { %s1978_s13 = sshll.u32 %s314_s11, 5  ;;  %s1930_s14 = sshll.u32 %s314_s11, 1 }
  0x39   : > { %s2585_s28 = scalar_lea.vmem %s2905_s1, %s1978_s13  ;;  %s2590_s8 = scalar_lea.vmem %s2907_s3, %s1978_s13 }
  0x3a   : > { %s2595_s29 = scalar_lea.vmem %s2908_s4, %s1930_s14 }
  0x3e PF: > { %v2604_v2 = vld [vmem:[#allocation5] sm:$0xff]  ;;  %vm365_vm1 = vcmask 261120   ;;  %v2606_v3 = vld [vmem:[#allocation5 + $0x8] sm:$0xff]  ;;  %v2431_v29 = vmov 0.0   ;;  %vm2432_vm2 = vmmov 0   ;;  %s2433_s21 = smov 120  }
  0x3f   : > { %v366_v4 = vsel %vm365_vm1, %v2604_v2, 0.0  ;;  %v369_v5 = vsel %vm365_vm1, %v2606_v3, 0.0  ;;  %v2617_v28 = vld [vmem:[%s2574_s26] ss:$8 sps:$4 sm:$0xff]   ;;  %2028 = vmatprep.subr.bf16.mxu0 %v2431_v29  ;;  %2032 = vmatprep.mubr.msk.bf16.mxu0 %vm2432_vm2, %v2431_v29  ;;  %v2624_v30 = vld [vmem:[%s2574_s26 + $0x10] ss:$8 sps:$4 sm:$0xff]  }
  0x40   : > { %367 = vadd.xlane.f32.xlu0 %v366_v4  ;;  %2029 = vmatpush3.bf16.msra.mxu0 %v2617_v28  ;;  %v340_v51 = vld [vmem:[%s2585_s28] sm:$0xff]  ;;  %v1932_v55 = vld [vmem:[%s2585_s28 + $0x8] sm:$0xff]  ;;  %s2434_s11 = smov 104   ;;  %s2435_s13 = smov 112   ;;  %vm503_vm3 = vcmask 64512   ;;  %vm1015_vm4 = vcmask 1043456  }
  0x41   : > { %2036 = vmatprep.subr.bf16.mxu1 %v2431_v29  ;;  %2030 = vmatprep.subr.bf16.mxu0 %v2431_v29  ;;  %v2638_v60 = vld [vmem:[%s2595_s29] ss:$0 sm:$0xff]  ;;  %s2436_s14 = smov 96   ;;  %s2437_s15 = smov 64   ;;  %vm1429_vm5 = vcmask 130048   ;;  %vm1432_vm6 = vcmask 195584  }
  0x42   : > { %2038 = vmatprep.mubr.msk.bf16.mxu1 %vm2432_vm2, %v2431_v29  ;;  %s2438_s27 = smov 32   ;;  %s2439_s6 = smov 8   ;;  %vm1690_vm9 = vcmask 523264  }
  0x43   : > { %s2440_s7 = smov 16   ;;  %s2441_s9 = smov 24  }
  0x44   : > { %370 = vadd.xlane.f32.xlu0 %v369_v5  ;;  %2031 = vmatpush3.bf16.msra.mxu0 %v2624_v30  ;;  %p2857_p9 = scmp.eq.s32.totalorder %s1917_s24, 2 }
  0x45   : > { %2042 = vmatprep.subr.bf16.mxu0 %v2431_v29 }
  0xcd   : > { %v368_v6 = vpop.xlane.xlu0 %367 }
  0xce   : > { %v372_v7 = vrot.slane %v368_v6, 4 }
  0xd0   : > { %v373_v8 = vadd.f32 %v372_v7, %v368_v6 }
  0xd1   : > { %v371_v9 = vpop.xlane.xlu0 %370 }
  0xd2   : > { %v374_v10 = vrot.slane %v373_v8, 2  ;;  %v378_v11 = vrot.slane %v371_v9, 4 }
  0xd4   : > { %v375_v12 = vadd.f32 %v374_v10, %v373_v8  ;;  %v379_v13 = vadd.f32 %v378_v11, %v371_v9 }
  0xd6   : > { %v376_v14 = vrot.slane %v375_v12, 1  ;;  %v380_v15 = vrot.slane %v379_v13, 2 }
  0xd8   : > { %v377_v16 = vadd.f32 %v376_v14, %v375_v12  ;;  %v381_v17 = vadd.f32 %v380_v15, %v379_v13 }
  0xda   : > { %v382_v18 = vrot.slane %v381_v17, 1  ;;  %v384_v19 = vmul.f32 0.00390625, %v377_v16 }
  0xdc   : > { %v383_v20 = vadd.f32 %v382_v18, %v381_v17  ;;  %v386_v21 = vsub.f32 %v2604_v2, %v384_v19 }
  0xde   : > { %v385_v22 = vmul.f32 0.00390625, %v383_v20  ;;  %v388_v23 = vmul.f32 %v386_v21, %v386_v21 }
  0xe0   : > { %v390_v24 = vsel %vm365_vm1, %v388_v23, 0.0  ;;  %v387_v25 = vsub.f32 %v2606_v3, %v385_v22 }
  0xe1   : > { %391 = vadd.xlane.f32.xlu1 %v390_v24 }
  0xe2   : > { %v389_v26 = vmul.f32 %v387_v25, %v387_v25 }
  0xe4   : > { %v393_v27 = vsel %vm365_vm1, %v389_v26, 0.0 }
  0xe5   : > { %394 = vadd.xlane.f32.xlu1 %v393_v27 }
 0x16e   : > { %v392_v31 = vpop.xlane.xlu1 %391 }
 0x16f   : > { %v396_v32 = vrot.slane %v392_v31, 4 }
 0x171   : > { %v397_v33 = vadd.f32 %v396_v32, %v392_v31 }
 0x172   : > { %v395_v34 = vpop.xlane.xlu1 %394 }
 0x173   : > { %v398_v35 = vrot.slane %v397_v33, 2  ;;  %v402_v36 = vrot.slane %v395_v34, 4 }
 0x175   : > { %v399_v37 = vadd.f32 %v398_v35, %v397_v33  ;;  %v403_v38 = vadd.f32 %v402_v36, %v395_v34 }
 0x177   : > { %v400_v39 = vrot.slane %v399_v37, 1  ;;  %v404_v40 = vrot.slane %v403_v38, 2 }
 0x179   : > { %v401_v41 = vadd.f32 %v400_v39, %v399_v37  ;;  %v405_v42 = vadd.f32 %v404_v40, %v403_v38 }
 0x17b   : > { %v408_v43 = vmul.f32 0.00390625, %v401_v41  ;;  %v406_v44 = vrot.slane %v405_v42, 1 }
 0x17d   : > { %v410_v45 = vadd.f32 1e-05, %v408_v43  ;;  %v407_v46 = vadd.f32 %v406_v44, %v405_v42 }
 0x17f   : > { %2260 = vrsqrt.f32 %v410_v45  ;;  %v409_v47 = vmul.f32 0.00390625, %v407_v46 }
 0x181   : > { %v411_v48 = vadd.f32 1e-05, %v409_v47 }
 0x183   : > { %2262 = vrsqrt.f32 %v411_v48 }
 0x189   : > { %v2261_v49 = vpop.eup %2260 }
 0x18a   : > { %v414_v50 = vmul.f32 %v2261_v49, %v386_v21 }
 0x18c   : > { %v416_v54 = vmul.f32 %v414_v50, %v340_v51 }
 0x18d   : > { %v2263_v52 = vpop.eup %2262 }
 0x18e   : > { %v415_v53 = vmul.f32 %v2263_v52, %v387_v25  ;;  %v418_v57 = vadd.f32 %v1932_v55, %v416_v54 }
 0x190   : > { %v417_v56 = vmul.f32 %v415_v53, %v340_v51 }
 0x192   : > { %v419_v58 = vadd.f32 %v1932_v55, %v417_v56 }
 0x194   : > { %v420_v59 = vpack.c.bf16 %v419_v58, %v418_v57 }
 0x196   : > { %2033 = vmatmul.mubr.msk.bf16.vlgmr.msra.gmra.mrb[0].mxu0 %vm365_vm1, %v420_v59 }
 0x197   : > { %2044 = vmatprep.mubr.msk.bf16.mxu0 %vm2432_vm2, %v2431_v29 }
 0x269   : > { %v476_v61 = vpop.f32.mrb[0].mxu0 }
 0x26a   : > { %v477_v62 = vadd.f32 %v2638_v60, %v476_v61  ;;  %v2034_v63 = vpop.f32.mrb[1].mxu0 }
 0x26b   : > { %v479_v0 = vpop.f32.mrb[2].mxu0 }
 0x26c   : > { %v1980_v1 = vpack.c.bf16 %v477_v62, %v477_v62  ;;  %v480_v4 = vadd.f32 %v2638_v60, %v479_v0  ;;  %v2035_v5 = vpop.f32.mrb[3].mxu0 }
 0x26e   : > { %v1981_v6 = vpack.c.bf16 %v480_v4, %v480_v4  ;;  %489 = vrot.lane.b32.xlu0 %v1980_v1, %s2433_s21 }
 0x270   : > { %491 = vrot.lane.b32.xlu1 %v1981_v6, %s2433_s21 }
 0x272   : > { %497 = vrot.lane.b32.xlu0 %v1980_v1, %s2434_s11 }
 0x274   : > { %493 = vrot.lane.b32.xlu1 %v1980_v1, %s2435_s13 }
 0x276   : > { %501 = vrot.lane.b32.xlu0 %v1980_v1, %s2436_s14 }
 0x278   : > { %495 = vrot.lane.b32.xlu1 %v1981_v6, %s2435_s13 }
 0x27c   : > { %499 = vrot.lane.b32.xlu1 %v1981_v6, %s2434_s11 }
 0x280   : > { %550 = vrot.lane.b32.xlu1 %v1981_v6, %s2436_s14 }
 0x2e0   : > { %v490_v7 = vpop.permute.xlu0 %489 }
 0x2e1   : > { %v1943_v8 = vcombine.low %v490_v7, %v490_v7 }
 0x2e2   : > { %v492_v9 = vpop.permute.xlu1 %491 }
 0x2e3   : > { %v1945_v10 = vcombine.low %v492_v9, %v492_v9  ;;  %600 = vrot.lane.b32.xlu0 %v1943_v8, %s2436_s14 }
 0x2e4   : > { %v2645_v11 = vpop.permute.xlu0 %497 }
 0x2e5   : > { %650 = vrot.lane.b32.xlu1 %v1945_v10, %s2436_s14  ;;  %v2655_v17 = vcombine.low %v2645_v11, %v2645_v11 }
 0x2e6   : > { %v494_v12 = vpop.permute.xlu1 %493 }
 0x2e7   : > { %v2648_v13 = vcombine.low %v494_v12, %v494_v12 }
 0x2e8   : > { %v502_v14 = vpop.permute.xlu0 %501 }
 0x2e9   : > { %700 = vrot.lane.b32.xlu0 %v2648_v13, %s2436_s14  ;;  %v508_v15 = vsel %vm503_vm3, %v502_v14, 0 }
 0x2ea   : > { %2037 = vmatpush3.bf16.xpose.msra.mxu1 %v508_v15  ;;  %v496_v16 = vpop.permute.xlu1 %495 }
 0x2eb   : > { %v2657_v18 = vcombine.low %v496_v16, %v496_v16  ;;  %2048 = vmatprep.subr.bf16.mxu1 %v2431_v29 }
 0x2ed   : > { %800 = vrot.lane.b32.xlu0 %v2655_v17, %s2436_s14  ;;  %750 = vrot.lane.b32.xlu1 %v2657_v18, %s2436_s14 }
 0x2ee   : > { %v500_v19 = vpop.permute.xlu1 %499 }
 0x2ef   : > { %v2664_v20 = vcombine.low %v500_v19, %v500_v19 }
 0x2f1   : > { %2039 = vmatmul.mubr.msk.bf16.vlgmr.msra.gmra.mrb[0].mxu1 %vm503_vm3, %v1980_v1  ;;  %1010 = vrot.lane.b32.xlu0 %v1980_v1, %s2437_s15 }
 0x2f2   : > { %850 = vrot.lane.b32.xlu1 %v2664_v20, %s2436_s14  ;;  %v551_v21 = vpop.permute.xlu1 %550  ;;  %2050 = vmatprep.mubr.msk.bf16.mxu1 %vm2432_vm2, %v2431_v29 }
 0x2f3   : > { %v556_v22 = vsel %vm503_vm3, %v551_v21, 0 }
 0x2f4   : > { %2043 = vmatpush3.bf16.xpose.msra.mxu0 %v556_v22 }
 0x2f5   : > { %2054 = vmatprep.subr.bf16.mxu0 %v2431_v29 }
 0x2f6   : > { %1059 = vrot.lane.b32.xlu1 %v1981_v6, %s2437_s15 }
 0x2fa   : > { %1107 = vrot.lane.b32.xlu1 %v1943_v8, %s2437_s15 }
 0x2fb   : > { %2045 = vmatmul.mubr.msk.bf16.vlgmr.msra.gmra.mrb[4].mxu0 %vm503_vm3, %v1981_v6 }
 0x2fc   : > { %2056 = vmatprep.mubr.msk.bf16.mxu0 %vm2432_vm2, %v2431_v29 }
 0x2fe   : > { %1155 = vrot.lane.b32.xlu1 %v1945_v10, %s2437_s15 }
 0x355   : > { %v601_v23 = vpop.permute.xlu0 %600 }
 0x356   : > { %v606_v24 = vsel %vm503_vm3, %v601_v23, 0 }
 0x357   : > { %2049 = vmatpush3.bf16.xpose.msra.mxu1 %v606_v24  ;;  %v651_v25 = vpop.permute.xlu1 %650 }
 0x358   : > { %v656_v26 = vsel %vm503_vm3, %v651_v25, 0  ;;  %2060 = vmatprep.subr.bf16.mxu1 %v2431_v29 }
 0x359   : > { %2055 = vmatpush3.bf16.xpose.msra.mxu0 %v656_v26 }
 0x35a   : > { %2066 = vmatprep.subr.bf16.mxu0 %v2431_v29 }
 0x35b   : > { %v701_v27 = vpop.permute.xlu0 %700 }
 0x35c   : > { %v706_v31 = vsel %vm503_vm3, %v701_v27, 0 }
 0x35e   : > { %2051 = vmatmul.mubr.msk.bf16.vlgmr.msra.gmra.mrb[4].mxu1 %vm503_vm3, %v490_v7 }
 0x35f   : > { %2061 = vmatpush3.bf16.xpose.msra.mxu1 %v706_v31  ;;  %v751_v32 = vpop.permute.xlu1 %750  ;;  %2062 = vmatprep.mubr.msk.bf16.mxu1 %vm2432_vm2, %v2431_v29  ;;  %v801_v34 = vpop.permute.xlu0 %800 }
 0x360   : > { %v756_v33 = vsel %vm503_vm3, %v751_v32, 0  ;;  %2057 = vmatmul.mubr.msk.bf16.vlgmr.msra.gmra.mrb[8].mxu0 %vm503_vm3, %v492_v9  ;;  %2072 = vmatprep.subr.bf16.mxu1 %v2431_v29  ;;  %v806_v36 = vsel %vm503_vm3, %v801_v34, 0 }
 0x361   : > { %2067 = vmatpush3.bf16.xpose.msra.mxu0 %v756_v33  ;;  %2068 = vmatprep.mubr.msk.bf16.mxu0 %vm2432_vm2, %v2431_v29 }
 0x362   : > { %2078 = vmatprep.subr.bf16.mxu0 %v2431_v29 }
 0x363   : > { %v1011_v38 = vpop.permute.xlu0 %1010 }
 0x364   : > { %v851_v35 = vpop.permute.xlu1 %850  ;;  %v1017_v40 = vsel %vm1015_vm4, %v1011_v38, 0 }
 0x365   : > { %v856_v37 = vsel %vm503_vm3, %v851_v35, 0 }
 0x366   : > { %2063 = vmatmul.mubr.msk.bf16.vlgmr.msra.gmra.mrb[8].mxu1 %vm503_vm3, %v494_v12 }
 0x367   : > { %2073 = vmatpush3.bf16.xpose.msra.mxu1 %v806_v36  ;;  %2074 = vmatprep.mubr.msk.bf16.mxu1 %vm2432_vm2, %v2431_v29 }
 0x368   : > { %2069 = vmatmul.mubr.msk.bf16.vlgmr.msra.gmra.mrb[12].mxu0 %vm503_vm3, %v496_v16  ;;  %2084 = vmatprep.subr.bf16.mxu1 %v2431_v29  ;;  %v1060_v39 = vpop.permute.xlu1 %1059 }
 0x369   : > { %2079 = vmatpush3.bf16.xpose.msra.mxu0 %v856_v37  ;;  %2080 = vmatprep.mubr.msk.bf16.mxu0 %vm2432_vm2, %v2431_v29  ;;  %v1065_v41 = vsel %vm1015_vm4, %v1060_v39, 0 }
 0x36a   : > { %2090 = vmatprep.subr.bf16.mxu0 %v2431_v29 }
 0x36c   : > { %v1108_v22 = vpop.permute.xlu1 %1107 }
 0x36e   : > { %2075 = vmatmul.mubr.msk.bf16.vlgmr.msra.gmra.mrb[12].mxu1 %vm503_vm3, %v2645_v11 }
 0x36f   : > { %2085 = vmatpush3.bf16.msra.mxu1 %v1017_v40  ;;  %2086 = vmatprep.mubr.msk.bf16.mxu1 %vm2432_vm2, %v2431_v29 }
 0x370   : > { %2081 = vmatmul.mubr.msk.bf16.vlgmr.msra.gmra.mrb[16].mxu0 %vm503_vm3, %v500_v19  ;;  %2096 = vmatprep.subr.bf16.mxu1 %v2431_v29  ;;  %v1156_v26 = vpop.permute.xlu1 %1155 }
 0x371   : > { %2091 = vmatpush3.bf16.msra.mxu0 %v1065_v41  ;;  %2092 = vmatprep.mubr.msk.bf16.mxu0 %vm2432_vm2, %v2431_v29  ;;  %v1161_v37 = vsel %vm1015_vm4, %v1156_v26, 0 }
 0x372   : > { %2102 = vmatprep.subr.bf16.mxu0 %v2431_v29 }
 0x3c4   : > { %v544_v42 = vpop.f32.mrb[0].mxu1 }
 0x3c5   : > { %v2040_v43 = vpop.f32.mrb[1].mxu1  ;;  %v898_v44 = vsel %vm503_vm3, %v544_v42, -inf }
 0x3c6   : > { %v547_v45 = vpop.f32.mrb[2].mxu1  ;;  %899 = vmax.xlane.f32.xlu0 %v898_v44 }
 0x3c7   : > { %v2041_v46 = vpop.f32.mrb[3].mxu1 }
 0x3ce   : > { %v592_v47 = vpop.f32.mrb[4].mxu0 }
 0x3cf   : > { %v2046_v48 = vpop.f32.mrb[5].mxu0  ;;  %v901_v49 = vsel %vm503_vm3, %v592_v47, -inf }
 0x3d0   : > { %902 = vmax.xlane.f32.xlu1 %v901_v49  ;;  %v595_v50 = vpop.f32.mrb[6].mxu0 }
 0x3d1   : > { %v2047_v51 = vpop.f32.mrb[7].mxu0 }
 0x3e1   : > { %1251 = vrot.lane.b32.xlu1 %v2657_v18, %s2437_s15 }
 0x431   : > { %v2719_v52 = vpop.f32.mrb[4].mxu1 }
 0x432   : > { %v2052_v53 = vpop.f32.mrb[5].mxu1  ;;  %v904_v54 = vsel %vm503_vm3, %v2719_v52, -inf }
 0x433   : > { %v645_v55 = vpop.f32.mrb[6].mxu1  ;;  %905 = vmax.xlane.f32.xlu0 %v904_v54  ;;  %v2723_v56 = vpop.f32.mrb[8].mxu0 }
 0x434   : > { %v2053_v57 = vpop.f32.mrb[7].mxu1  ;;  %v2058_v58 = vpop.f32.mrb[9].mxu0  ;;  %v907_v62 = vsel %vm503_vm3, %v2723_v56, -inf }
 0x435   : > { %v695_v59 = vpop.f32.mrb[10].mxu0 }
 0x436   : > { %v2059_v61 = vpop.f32.mrb[11].mxu0 }
 0x437   : > { %908 = vmax.xlane.f32.xlu0 %v907_v62 }
 0x439   : > { %v2727_v63 = vpop.f32.mrb[8].mxu1 }
 0x43a   : > { %v2064_v0 = vpop.f32.mrb[9].mxu1 }
 0x43b   : > { %v745_v1 = vpop.f32.mrb[10].mxu1  ;;  %v792_v4 = vpop.f32.mrb[12].mxu0 }
 0x43c   : > { %v2065_v5 = vpop.f32.mrb[11].mxu1  ;;  %v2070_v6 = vpop.f32.mrb[13].mxu0  ;;  %v913_v7 = vsel %vm503_vm3, %v792_v4, -inf }
 0x43d   : > { %914 = vmax.xlane.f32.xlu1 %v913_v7  ;;  %v795_v8 = vpop.f32.mrb[14].mxu0 }
 0x43e   : > { %v2071_v9 = vpop.f32.mrb[15].mxu0 }
 0x441   : > { %v2730_v10 = vpop.f32.mrb[12].mxu1 }
 0x442   : > { %v2076_v11 = vpop.f32.mrb[13].mxu1  ;;  %v916_v38 = vsel %vm503_vm3, %v2730_v10, -inf }
 0x443   : > { %v845_v12 = vpop.f32.mrb[14].mxu1  ;;  %v2732_v14 = vpop.f32.mrb[16].mxu0 }
 0x444   : > { %v2077_v15 = vpop.f32.mrb[15].mxu1  ;;  %v2082_v16 = vpop.f32.mrb[17].mxu0  ;;  %v919_v18 = vsel %vm503_vm3, %v2732_v14, -inf }
 0x445   : > { %920 = vmax.xlane.f32.xlu1 %v919_v18  ;;  %v895_v19 = vpop.f32.mrb[18].mxu0 }
 0x446   : > { %v2083_v21 = vpop.f32.mrb[19].mxu0 }
 0x44d   : > { %1203 = vrot.lane.b32.xlu0 %v2648_v13, %s2437_s15  ;;  %v1113_v13 = vsel %vm1015_vm4, %v1108_v22, 0 }
 0x453   : > { %v900_v23 = vpop.xlane.xlu0 %899 }
 0x454   : > { %v922_v24 = vsub.f32 %v544_v42, %v900_v23 }
 0x456   : > { %v930_v25 = vmul.f32 1.442695, %v922_v24  ;;  %1347 = vrot.lane.b32.xlu1 %v2664_v20, %s2437_s15  ;;  %v910_v20 = vsel %vm503_vm3, %v2727_v63, -inf }
 0x458   : > { %2264 = vpow2.f32 %v930_v25 }
 0x45d   : > { %v903_v27 = vpop.xlane.xlu1 %902 }
 0x45e   : > { %v923_v31 = vsub.f32 %v592_v47, %v903_v27 }
 0x460   : > { %v932_v32 = vmul.f32 1.442695, %v923_v31 }
 0x461   : > { %v1252_v44 = vpop.permute.xlu1 %1251 }
 0x462   : > { %v2740_v33 = vpop.eup %2264  ;;  %2266 = vpow2.f32 %v932_v32  ;;  %v1257_v59 = vsel %vm1015_vm4, %v1252_v44, 0 }
 0x463   : > { %v1002_v34 = vpack.c.bf16 %v2740_v33, %v2740_v33  ;;  %v946_v25 = vsel %vm503_vm3, %v2740_v33, 0.0 }
 0x465   : > { %2087 = vmatmul.mubr.msk.bf16.vlgmr.msra.gmra.mrb[16].mxu1 %vm503_vm3, %v1002_v34 }
 0x466   : > { %2097 = vmatpush3.bf16.msra.mxu1 %v1113_v13  ;;  %2098 = vmatprep.mubr.msk.bf16.mxu1 %vm2432_vm2, %v2431_v29 }
 0x467   : > { %2108 = vmatprep.subr.bf16.mxu1 %v2431_v29 }
 0x46c   : > { %v2267_v35 = vpop.eup %2266  ;;  %911 = vmax.xlane.f32.xlu0 %v910_v20 }
 0x46d   : > { %v1003_v36 = vpack.c.bf16 %v2267_v35, %v2267_v35  ;;  %v949_v7 = vsel %vm503_vm3, %v2267_v35, 0.0 }
 0x46f   : > { %2093 = vmatmul.mubr.msk.bf16.vlgmr.msra.gmra.mrb[20].mxu0 %vm503_vm3, %v1003_v36 }
 0x470   : > { %2103 = vmatpush3.bf16.msra.mxu0 %v1161_v37  ;;  %917 = vmax.xlane.f32.xlu0 %v916_v38 }
 0x471   : > { %2104 = vmatprep.mubr.msk.bf16.mxu0 %vm2432_vm2, %v2431_v29  ;;  %2114 = vmatprep.subr.bf16.mxu0 %v2431_v29 }
 0x486   : > { %1299 = vrot.lane.b32.xlu0 %v2655_v17, %s2437_s15 }
 0x4c0   : > { %v906_v39 = vpop.xlane.xlu0 %905 }
 0x4c1   : > { %v924_v40 = vsub.f32 %v2719_v52, %v906_v39 }
 0x4c3   : > { %v934_v41 = vmul.f32 1.442695, %v924_v40 }
 0x4c4   : > { %v909_v42 = vpop.xlane.xlu0 %908 }
 0x4c5   : > { %2268 = vpow2.f32 %v934_v41  ;;  %v925_v43 = vsub.f32 %v2723_v56, %v909_v42 }
 0x4c7   : > { %v936_v45 = vmul.f32 1.442695, %v925_v43 }
 0x4c8   : > { %v1204_v50 = vpop.permute.xlu0 %1203 }
 0x4c9   : > { %2270 = vpow2.f32 %v936_v45  ;;  %v1209_v52 = vsel %vm1015_vm4, %v1204_v50, 0 }
 0x4ca   : > { %v915_v46 = vpop.xlane.xlu1 %914 }
 0x4cb   : > { %v927_v47 = vsub.f32 %v792_v4, %v915_v46 }
 0x4cd   : > { %v940_v48 = vmul.f32 1.442695, %v927_v47 }
 0x4cf   : > { %v2269_v49 = vpop.eup %2268  ;;  %2272 = vpow2.f32 %v940_v48 }
 0x4d0   : > { %v952_v51 = vsel %vm503_vm3, %v2269_v49, 0.0  ;;  %v1004_v17 = vpack.c.bf16 %v2269_v49, %v2269_v49 }
 0x4d1   : > { %953 = vadd.xlane.f32.xlu0 %v952_v51 }
 0x4d2   : > { %2099 = vmatmul.mubr.msk.bf16.vlgmr.msra.gmra.mrb[20].mxu1 %vm503_vm3, %v1004_v17  ;;  %v921_v53 = vpop.xlane.xlu1 %920 }
 0x4d3   : > { %v2271_v54 = vpop.eup %2270  ;;  %2109 = vmatpush3.bf16.msra.mxu1 %v1209_v52  ;;  %v929_v55 = vsub.f32 %v2732_v14, %v921_v53  ;;  %2110 = vmatprep.mubr.msk.bf16.mxu1 %vm2432_vm2, %v2431_v29 }
 0x4d4   : > { %v955_v56 = vsel %vm503_vm3, %v2271_v54, 0.0  ;;  %v1005_v57 = vpack.c.bf16 %v2271_v54, %v2271_v54  ;;  %2120 = vmatprep.subr.bf16.mxu1 %v2431_v29 }
 0x4d5   : > { %v944_v58 = vmul.f32 1.442695, %v929_v55  ;;  %956 = vadd.xlane.f32.xlu1 %v955_v56 }
 0x4d6   : > { %2105 = vmatmul.mubr.msk.bf16.vlgmr.msra.gmra.mrb[24].mxu0 %vm503_vm3, %v1005_v57  ;;  %v1348_v62 = vpop.permute.xlu1 %1347 }
 0x4d7   : > { %2274 = vpow2.f32 %v944_v58  ;;  %2115 = vmatpush3.bf16.msra.mxu0 %v1257_v59  ;;  %2116 = vmatprep.mubr.msk.bf16.mxu0 %vm2432_vm2, %v2431_v29  ;;  %v1353_v1 = vsel %vm1015_vm4, %v1348_v62, 0 }
 0x4d8   : > { %2126 = vmatprep.subr.bf16.mxu0 %v2431_v29 }
 0x4d9   : > { %v2273_v61 = vpop.eup %2272 }
 0x4da   : > { %v1007_v0 = vpack.c.bf16 %v2273_v61, %v2273_v61 }
 0x4de   : > { %2117 = vmatmul.mubr.msk.bf16.vlgmr.msra.gmra.mrb[28].mxu0 %vm503_vm3, %v1007_v0 }
 0x4df   : > { %2127 = vmatpush3.bf16.msra.mxu0 %v1353_v1  ;;  %2128 = vmatprep.mubr.msk.bf16.mxu0 %vm2432_vm2, %v2431_v29 }
 0x4e0   : > { %2140 = vmatprep.subr.bf16.mxu0 %v2431_v29 }
 0x4e1   : > { %v2275_v4 = vpop.eup %2274 }
 0x4e2   : > { %v967_v5 = vsel %vm503_vm3, %v2275_v4, 0.0  ;;  %v1009_v6 = vpack.c.bf16 %v2275_v4, %v2275_v4 }
 0x4e3   : > { %968 = vadd.xlane.f32.xlu1 %v967_v5 }
 0x4e6   : > { %2129 = vmatmul.mubr.msk.bf16.vlgmr.msra.gmra.mrb[32].mxu0 %vm503_vm3, %v1009_v6 }
 0x4e7   : > { %950 = vadd.xlane.f32.xlu1 %v949_v7  ;;  %2144 = vmatprep.mubr.msk.bf16.mxu0 %vm2432_vm2, %v2431_v29 }
 0x4f9   : > { %v912_v8 = vpop.xlane.xlu0 %911 }
 0x4fa   : > { %v926_v9 = vsub.f32 %v2727_v63, %v912_v8  ;;  %v961_v63 = vsel %vm503_vm3, %v2273_v61, 0.0 }
 0x4fc   : > { %v938_v11 = vmul.f32 1.442695, %v926_v9 }
 0x4fd   : > { %v918_v12 = vpop.xlane.xlu0 %917 }
 0x4fe   : > { %2276 = vpow2.f32 %v938_v11  ;;  %v928_v14 = vsub.f32 %v2730_v10, %v918_v12 }
 0x500   : > { %v942_v15 = vmul.f32 1.442695, %v928_v14 }
 0x501   : > { %v1300_v18 = vpop.permute.xlu0 %1299 }
 0x502   : > { %2278 = vpow2.f32 %v942_v15  ;;  %v1305_v22 = vsel %vm1015_vm4, %v1300_v18, 0 }
 0x508   : > { %v2277_v16 = vpop.eup %2276 }
 0x509   : > { %v958_v19 = vsel %vm503_vm3, %v2277_v16, 0.0  ;;  %v1006_v21 = vpack.c.bf16 %v2277_v16, %v2277_v16 }
 0x50a   : > { %959 = vadd.xlane.f32.xlu0 %v958_v19 }
 0x50b   : > { %2111 = vmatmul.mubr.msk.bf16.vlgmr.msra.gmra.mrb[24].mxu1 %vm503_vm3, %v1006_v21 }
 0x50c   : > { %2121 = vmatpush3.bf16.msra.mxu1 %v1305_v22  ;;  %2122 = vmatprep.mubr.msk.bf16.mxu1 %vm2432_vm2, %v2431_v29  ;;  %v2279_v10 = vpop.eup %2278 }
 0x50d   : > { %2132 = vmatprep.subr.bf16.mxu1 %v2431_v29  ;;  %v964_v23 = vsel %vm503_vm3, %v2279_v10, 0.0  ;;  %v1008_v24 = vpack.c.bf16 %v2279_v10, %v2279_v10 }
 0x50e   : > { %962 = vadd.xlane.f32.xlu0 %v961_v63 }
 0x512   : > { %965 = vadd.xlane.f32.xlu0 %v964_v23 }
 0x513   : > { %2123 = vmatmul.mubr.msk.bf16.vlgmr.msra.gmra.mrb[28].mxu1 %vm503_vm3, %v1008_v24 }
 0x514   : > { %2136 = vmatprep.mubr.msk.bf16.mxu1 %vm2432_vm2, %v2431_v29 }
 0x516   : > { %947 = vadd.xlane.f32.xlu0 %v946_v25 }
 0x52c   : > { %1436 = vrot.lane.b32.xlu0 %v2617_v28, %s2438_s27 }
 0x530   : > { %1438 = vrot.lane.b32.xlu0 %v2624_v30, %s2438_s27 }
 0x538   : > { %v1053_v26 = vpop.f32.mrb[16].mxu1 }
 0x539   : > { %v2088_v27 = vpop.f32.mrb[17].mxu1 }
 0x53a   : > { %v1056_v31 = vpop.f32.mrb[18].mxu1 }
 0x53b   : > { %v2089_v32 = vpop.f32.mrb[19].mxu1 }
 0x542   : > { %v2800_v34 = vpop.f32.mrb[20].mxu0 }
 0x543   : > { %v2094_v13 = vpop.f32.mrb[21].mxu0 }
 0x544   : > { %v1104_v20 = vpop.f32.mrb[22].mxu0 }
 0x545   : > { %v2095_v35 = vpop.f32.mrb[23].mxu0 }
 0x55e   : > { %v954_v36 = vpop.xlane.xlu0 %953 }
 0x55f   : > { %2280 = vrcp.f32 %v954_v36 }
 0x562   : > { %v957_v37 = vpop.xlane.xlu1 %956 }
 0x563   : > { %2282 = vrcp.f32 %v957_v37 }
 0x569   : > { %v2281_v39 = vpop.eup %2280 }
 0x56a   : > { %v980_v42 = vmul.f32 %v2281_v39, %v954_v36 }
 0x56c   : > { %v988_v45 = vsub.f32 2.0, %v980_v42 }
 0x56d   : > { %v2283_v40 = vpop.eup %2282 }
 0x56e   : > { %v981_v43 = vmul.f32 %v2283_v40, %v957_v37  ;;  %v996_v49 = vmul.f32 %v2281_v39, %v988_v45 }
 0x570   : > { %v989_v46 = vsub.f32 2.0, %v981_v43  ;;  %v969_v11 = vpop.xlane.xlu1 %968 }
 0x572   : > { %v997_v50 = vmul.f32 %v2283_v40, %v989_v46 }
 0x597   : > { %v960_v33 = vpop.xlane.xlu0 %959 }
 0x59b   : > { %v963_v38 = vpop.xlane.xlu0 %962 }
 0x59f   : > { %v966_v41 = vpop.xlane.xlu0 %965 }
 0x5a3   : > { %v948_v44 = vpop.xlane.xlu0 %947 }
 0x5a4   : > { %2284 = vrcp.f32 %v948_v44 }
 0x5a5   : > { %v1149_v47 = vpop.f32.mrb[20].mxu1  ;;  %2286 = vrcp.f32 %v960_v33 }
 0x5a6   : > { %v2100_v28 = vpop.f32.mrb[21].mxu1  ;;  %v1397_v17 = vmul.f32 %v1149_v47, %v996_v49  ;;  %2288 = vrcp.f32 %v963_v38  ;;  %v951_v47 = vpop.xlane.xlu1 %950 }
 0x5a7   : > { %v1152_v48 = vpop.f32.mrb[22].mxu1  ;;  %2290 = vrcp.f32 %v969_v11  ;;  %v1437_v63 = vpop.permute.xlu0 %1436 }
 0x5a8   : > { %v2101_v30 = vpop.f32.mrb[23].mxu1  ;;  %2292 = vrcp.f32 %v966_v41  ;;  %2133 = vmatpush3.bf16.msra.mxu1 %v1437_v63 }
 0x5a9   : > { %v1197_v51 = vpop.f32.mrb[24].mxu0  ;;  %2134 = vmatprep.subr.bf16.mxu1 %v2431_v29  ;;  %2294 = vrcp.f32 %v951_v47 }
 0x5aa   : > { %v1398_v52 = vmul.f32 %v1197_v51, %v997_v50  ;;  %v2106_v53 = vpop.f32.mrb[25].mxu0 }
 0x5ab   : > { %v1200_v54 = vpop.f32.mrb[26].mxu0  ;;  %v1439_v20 = vpop.permute.xlu0 %1438 }
 0x5ac   : > { %v2237_v55 = vpack.i.bf16 %v1398_v52, %v1397_v17  ;;  %v2107_v56 = vpop.f32.mrb[27].mxu0  ;;  %2135 = vmatpush3.bf16.msra.mxu1 %v1439_v20 }
 0x5ad   : > { %2148 = vmatprep.subr.bf16.mxu1 %v2431_v29 }
 0x5ae   : > { %v2285_v57 = vpop.eup %2284  ;;  %2238 = vrot.lane.b32.xlu1 %v2237_v55, %s2439_s6 }
 0x5af   : > { %v978_v58 = vmul.f32 %v2285_v57, %v948_v44  ;;  %v2287_v12 = vpop.eup %2286 }
 0x5b0   : > { %v2289_v14 = vpop.eup %2288  ;;  %v982_v15 = vmul.f32 %v2287_v12, %v960_v33 }
 0x5b1   : > { %v986_v59 = vsub.f32 2.0, %v978_v58  ;;  %v1293_v61 = vpop.f32.mrb[28].mxu0  ;;  %v983_v16 = vmul.f32 %v2289_v14, %v963_v38  ;;  %v2291_v18 = vpop.eup %2290 }
 0x5b2   : > { %v2118_v62 = vpop.f32.mrb[29].mxu0  ;;  %v990_v19 = vsub.f32 2.0, %v982_v15  ;;  %v2293_v22 = vpop.eup %2292  ;;  %v985_v10 = vmul.f32 %v2291_v18, %v969_v11 }
 0x5b3   : > { %v994_v0 = vmul.f32 %v2285_v57, %v986_v59  ;;  %v1296_v1 = vpop.f32.mrb[30].mxu0  ;;  %v991_v21 = vsub.f32 2.0, %v983_v16  ;;  %v984_v23 = vmul.f32 %v2293_v22, %v966_v41  ;;  %v2295_v28 = vpop.eup %2294 }
 0x5b4   : > { %v2119_v4 = vpop.f32.mrb[31].mxu0  ;;  %v998_v25 = vmul.f32 %v2287_v12, %v990_v19  ;;  %v993_v35 = vsub.f32 2.0, %v985_v10  ;;  %v979_v48 = vmul.f32 %v2295_v28, %v951_v47 }
 0x5b5   : > { %v2807_v5 = vmul.f32 %v1053_v26, %v994_v0  ;;  %v999_v24 = vmul.f32 %v2289_v14, %v991_v21  ;;  %v992_v36 = vsub.f32 2.0, %v984_v23 }
 0x5b6   : > { %v1001_v38 = vmul.f32 %v2291_v18, %v993_v35  ;;  %v987_v49 = vsub.f32 2.0, %v979_v48 }
 0x5b7   : > { %v1400_v27 = vmul.f32 %v1293_v61, %v999_v24  ;;  %v1000_v39 = vmul.f32 %v2293_v22, %v992_v36 }
 0x5b8   : > { %v995_v50 = vmul.f32 %v2295_v28, %v987_v49 }
 0x5b9   : > { %v1389_v6 = vpop.f32.mrb[32].mxu0 }
 0x5ba   : > { %v2130_v7 = vpop.f32.mrb[33].mxu0  ;;  %v1402_v41 = vmul.f32 %v1389_v6, %v1001_v38  ;;  %v1396_v55 = vmul.f32 %v2800_v34, %v995_v50 }
 0x5bb   : > { %v1392_v8 = vpop.f32.mrb[34].mxu0 }
 0x5bc   : > { %v2131_v9 = vpop.f32.mrb[35].mxu0 }
 0x5de   : > { %v1245_v26 = vpop.f32.mrb[24].mxu1 }
 0x5df   : > { %v1399_v31 = vmul.f32 %v1245_v26, %v998_v25  ;;  %v2112_v32 = vpop.f32.mrb[25].mxu1 }
 0x5e0   : > { %v1248_v13 = vpop.f32.mrb[26].mxu1 }
 0x5e1   : > { %v2242_v37 = vpack.i.bf16 %v1400_v27, %v1399_v31  ;;  %v2113_v33 = vpop.f32.mrb[27].mxu1 }
 0x5e3   : > { %2243 = vrot.lane.b32.xlu1 %v2242_v37, %s2440_s7 }
 0x5e6   : > { %v1341_v40 = vpop.f32.mrb[28].mxu1 }
 0x5e7   : > { %v1401_v42 = vmul.f32 %v1341_v40, %v1000_v39  ;;  %v2124_v43 = vpop.f32.mrb[29].mxu1  ;;  %v2254_v39 = vld [vmem:[%s2574_s26 + $0x4] ss:$8 sps:$4 sm:$0xff]   ;;  %v2255_v40 = vld [vmem:[%s2574_s26 + $0x14] ss:$8 sps:$4 sm:$0xff]   ;;  %s2443_s26 = smov [#allocation5]  }
 0x5e8   : > { %v1344_v44 = vpop.f32.mrb[30].mxu1  ;;  %2141 = vmatpush3.bf16.msra.mxu0 %v2254_v39 }
 0x5e9   : > { %v2247_v45 = vpack.i.bf16 %v1402_v41, %v1401_v42  ;;  %v2125_v46 = vpop.f32.mrb[31].mxu1  ;;  %2142 = vmatprep.subr.bf16.mxu0 %v2431_v29  ;;  %v1964_v41 = vld [vmem:[%s2595_s29 + $0x1] ss:$0 sm:$0xff] }
 0x5eb   : > { %2248 = vrot.lane.b32.xlu1 %v2247_v45, %s2441_s9 }
 0x5ec   : > { %2143 = vmatpush3.bf16.msra.mxu0 %v2255_v40 }
 0x5ef   : > { %1442 = vrot.lane.b32.xlu1 %v2638_v60, %s2438_s27 }
 0x620   : > { %v2239_v30 = vpop.permute.xlu1 %2238 }
 0x621   : > { %v2241_v17 = vunpack.i.h.bf16 %v2239_v30  ;;  %v2240_v52 = vunpack.i.l.bf16 %v2239_v30 }
 0x623   : > { %v1428_v57 = vsel %vm503_vm3, %v1396_v55, %v2241_v17  ;;  %v1427_v60 = vsel %vm503_vm3, %v2807_v5, %v2240_v52 }
 0x655   : > { %v2244_v51 = vpop.permute.xlu1 %2243 }
 0x656   : > { %v2246_v53 = vunpack.i.h.bf16 %v2244_v51  ;;  %v2245_v54 = vunpack.i.l.bf16 %v2244_v51 }
 0x658   : > { %v1431_v61 = vsel %vm1429_vm5, %v1428_v57, %v2246_v53  ;;  %v1430_v62 = vsel %vm1429_vm5, %v1427_v60, %v2245_v54 }
 0x65d   : > { %v2249_v56 = vpop.permute.xlu1 %2248 }
 0x65e   : > { %v2251_v58 = vunpack.i.h.bf16 %v2249_v56  ;;  %v2250_v59 = vunpack.i.l.bf16 %v2249_v56 }
 0x660   : > { %v1434_v0 = vsel %vm1432_vm6, %v1431_v61, %v2251_v58  ;;  %v1433_v1 = vsel %vm1432_vm6, %v1430_v62, %v2250_v59  ;;  %v1933_v58 = vld [vmem:[%s2585_s28 + $0x10] sm:$0xff] }
 0x661   : > { %v1435_v4 = vpack.c.bf16 %v1434_v0, %v1433_v1  ;;  %v1443_v34 = vpop.permute.xlu1 %1442  ;;  %v1934_v0 = vld [vmem:[%s2585_s28 + $0x18] sm:$0xff]  ;;  %s1802_s28 = sshll.u32 %s2443_s26, 4  ;;  %s1803_s28 = int_to_ptr.vmem [resolvable:$true] %s1802_s28 }
 0x662   : > { %s2346_s10 = scalar_lea.vmem %s1803_s28, 256  ;;  %p2353_p10 = scmp.lt.s32.totalorder %s1803_s28, %s1803_s28 }
 0x663   : > { %2137 = vmatmul.mubr.msk.bf16.vlgmr.msra.gmra.mrb[32].mxu1 %vm365_vm1, %v1435_v4  ;;  %p2347_p5 = scmp.ne.s32.totalorder %s1803_s28, %s2346_s10  ;;  %p2354_p12 = scmp.lt.s32.totalorder %s2346_s10, %s2346_s10 }
 0x664   : > { %2156 = vmatprep.mubr.msk.bf16.mxu1 %vm2432_vm2, %v2431_v29 }
 0x665   : > { %p2348_p6 = pnand %p2347_p5, %p2857_p9  ;;  %p2355_p0 = por %p2354_p12, %p2353_p10 }
 0x667   : > { %p2349_p8 = pneg %p2348_p6 }
 0x669   : > { %p2356_p1 = pnand %p2355_p0, %p2349_p8 }
 0x736   : > { %v1482_v6 = vpop.f32.mrb[32].mxu1 }
 0x737   : > { %v1483_v7 = vadd.f32 %v1482_v6, %v1443_v34  ;;  %v2138_v8 = vpop.f32.mrb[33].mxu1 }
 0x738   : > { %v1485_v9 = vpop.f32.mrb[34].mxu1  ;;  %v2257_v8 = vld [vmem:[%s2590_s8 + $0x8] sm:$0xff]  }
 0x739   : > { %v2821_v11 = vadd.f32 %v1483_v7, %v2604_v2  ;;  %v1486_v5 = vadd.f32 %v1485_v9, %v1443_v34  ;;  %v2139_v12 = vpop.f32.mrb[35].mxu1  ;;  %v2256_v7 = vld [vmem:[%s2590_s8] sm:$0xff]   ;;  %v2258_v9 = vld [vmem:[%s2590_s8 + $0x10] sm:$0xff]  }
 0x73a   : > { %2149 = vmatpush3.bf16.msra.mxu1 %v2256_v7 }
 0x73b   : > { %v2824_v14 = vadd.f32 %v1486_v5, %v2606_v3  ;;  %v1491_v15 = vsel %vm365_vm1, %v2821_v11, 0.0  ;;  %2150 = vmatprep.subr.bf16.mxu1 %v2431_v29  ;;  %v2259_v5 = vld [vmem:[%s2590_s8 + $0x18] sm:$0xff]  }
 0x73c   : > { %1492 = vadd.xlane.f32.xlu0 %v1491_v15 }
 0x73d   : > { %v1494_v16 = vsel %vm365_vm1, %v2824_v14, 0.0 }
 0x73e   : > { %1495 = vadd.xlane.f32.xlu1 %v1494_v16  ;;  %2151 = vmatpush3.bf16.msra.mxu1 %v2257_v8 }
 0x73f   : > { %2152 = vmatprep.subr.bf16.mxu1 %v2431_v29 }
 0x742   : > { %2153 = vmatpush3.bf16.msra.mxu1 %v2258_v9 }
 0x743   : > { %2154 = vmatprep.subr.bf16.mxu1 %v2431_v29 }
 0x746   : > { %2155 = vmatpush3.bf16.msra.mxu1 %v2259_v5 }
 0x7c9   : > { %v1493_v18 = vpop.xlane.xlu0 %1492 }
 0x7ca   : > { %v1497_v19 = vrot.slane %v1493_v18, 4 }
 0x7cb   : > { %v1496_v21 = vpop.xlane.xlu1 %1495 }
 0x7cc   : > { %v1498_v22 = vadd.f32 %v1497_v19, %v1493_v18  ;;  %v1503_v63 = vrot.slane %v1496_v21, 4 }
 0x7ce   : > { %v1499_v2 = vrot.slane %v1498_v22, 2  ;;  %v1504_v10 = vadd.f32 %v1503_v63, %v1496_v21 }
 0x7d0   : > { %v1500_v23 = vadd.f32 %v1499_v2, %v1498_v22  ;;  %v1505_v24 = vrot.slane %v1504_v10, 2 }
 0x7d2   : > { %v1501_v3 = vrot.slane %v1500_v23, 1  ;;  %v1506_v25 = vadd.f32 %v1505_v24, %v1504_v10 }
 0x7d4   : > { %v1502_v26 = vadd.f32 %v1501_v3, %v1500_v23  ;;  %v1507_v27 = vrot.slane %v1506_v25, 1 }
 0x7d6   : > { %v1509_v31 = vmul.f32 0.00390625, %v1502_v26  ;;  %v1508_v32 = vadd.f32 %v1507_v27, %v1506_v25 }
 0x7d8   : > { %v1510_v13 = vmul.f32 0.00390625, %v1508_v32  ;;  %v1511_v20 = vsub.f32 %v2821_v11, %v1509_v31 }
 0x7da   : > { %v1513_v35 = vmul.f32 %v1511_v20, %v1511_v20  ;;  %v1512_v36 = vsub.f32 %v2824_v14, %v1510_v13 }
 0x7dc   : > { %v1515_v37 = vsel %vm365_vm1, %v1513_v35, 0.0  ;;  %v1514_v33 = vmul.f32 %v1512_v36, %v1512_v36 }
 0x7dd   : > { %1516 = vadd.xlane.f32.xlu0 %v1515_v37 }
 0x7de   : > { %v1518_v38 = vsel %vm365_vm1, %v1514_v33, 0.0 }
 0x7e1   : > { %1519 = vadd.xlane.f32.xlu0 %v1518_v38 }
 0x7f7   : > { %1687 = vrot.lane.b32.xlu0 %v1964_v41, %s2437_s15 }
 0x86a   : > { %v1517_v42 = vpop.xlane.xlu0 %1516 }
 0x86b   : > { %v1521_v43 = vrot.slane %v1517_v42, 4 }
 0x86d   : > { %v1522_v44 = vadd.f32 %v1521_v43, %v1517_v42 }
 0x86e   : > { %v1520_v45 = vpop.xlane.xlu0 %1519 }
 0x86f   : > { %v1523_v46 = vrot.slane %v1522_v44, 2  ;;  %v1527_v47 = vrot.slane %v1520_v45, 4 }
 0x871   : > { %v1524_v28 = vadd.f32 %v1523_v46, %v1522_v44  ;;  %v1528_v48 = vadd.f32 %v1527_v47, %v1520_v45 }
 0x872   : > { %v1688_v7 = vpop.permute.xlu0 %1687 }
 0x873   : > { %v1525_v49 = vrot.slane %v1524_v28, 1  ;;  %v1529_v30 = vrot.slane %v1528_v48, 2 }
 0x875   : > { %v1526_v50 = vadd.f32 %v1525_v49, %v1524_v28  ;;  %v1530_v51 = vadd.f32 %v1529_v30, %v1528_v48 }
 0x877   : > { %v1533_v17 = vmul.f32 0.00390625, %v1526_v50  ;;  %v1531_v52 = vrot.slane %v1530_v51, 1 }
 0x879   : > { %v1535_v53 = vadd.f32 1e-05, %v1533_v17  ;;  %v1532_v54 = vadd.f32 %v1531_v52, %v1530_v51 }
 0x87b   : > { %2296 = vrsqrt.f32 %v1535_v53  ;;  %v1534_v55 = vmul.f32 0.00390625, %v1532_v54  ;;  %v2442_v54 = vmov -1.0  }
 0x87d   : > { %v1536_v56 = vadd.f32 1e-05, %v1534_v55 }
 0x87f   : > { %2298 = vrsqrt.f32 %v1536_v56 }
 0x885   : > { %v2297_v57 = vpop.eup %2296 }
 0x886   : > { %v1539_v60 = vmul.f32 %v2297_v57, %v1511_v20 }
 0x888   : > { %v1541_v62 = vmul.f32 %v1933_v58, %v1539_v60 }
 0x889   : > { %v2299_v59 = vpop.eup %2298 }
 0x88a   : > { %v1540_v61 = vmul.f32 %v2299_v59, %v1512_v36  ;;  %v1543_v4 = vadd.f32 %v1934_v0, %v1541_v62 }
 0x88c   : > { %v1542_v1 = vmul.f32 %v1933_v58, %v1540_v61 }
 0x88e   : > { %v1544_v34 = vadd.f32 %v1934_v0, %v1542_v1 }
 0x890   : > { %v1545_v6 = vpack.c.bf16 %v1544_v34, %v1543_v4 }
 0x892   : > { %2145 = vmatmul.mubr.msk.bf16.vlgmr.msra.gmra.mrb[36].mxu0 %vm365_vm1, %v1545_v6 }
 0x965   : > { %v1601_v12 = vpop.f32.mrb[36].mxu0 }
 0x966   : > { %v1602_v15 = vadd.f32 %v1964_v41, %v1601_v12  ;;  %v2146_v16 = vpop.f32.mrb[37].mxu0 }
 0x967   : > { %v1604_v18 = vpop.f32.mrb[38].mxu0 }
 0x968   : > { %v1610_v19 = vmul.f32 0.70710677, %v1602_v15  ;;  %v1605_v21 = vadd.f32 %v1964_v41, %v1604_v18  ;;  %v2147_v22 = vpop.f32.mrb[39].mxu0  ;;  %v1608_v62 = vmul.f32 0.5, %v1602_v15 }
 0x96a   : > { %v1616_v63 = vand.u32 2147483647, %v1610_v19  ;;  %v1611_v2 = vmul.f32 0.70710677, %v1605_v21  ;;  %vm1612_vm7 = vcmp.ge.f32.partialorder %v1610_v19, 0.0  ;;  %v1609_v0 = vmul.f32 0.5, %v1605_v21 }
 0x96b   : > { %v1614_v55 = vsel %vm1612_vm7, 1.0, %v2442_v54 }
 0x96c   : > { %v1618_v10 = vmul.f32 0.3275911, %v1616_v63  ;;  %v1617_v23 = vand.u32 2147483647, %v1611_v2  ;;  %v1644_v26 = vsub.f32 0.0, %v1616_v63  ;;  %vm1613_vm8 = vcmp.ge.f32.partialorder %v1611_v2, 0.0 }
 0x96d   : > { %v1615_v58 = vsel %vm1613_vm8, 1.0, %v2442_v54 }
 0x96e   : > { %v1620_v24 = vadd.f32 1.0, %v1618_v10  ;;  %v1619_v3 = vmul.f32 0.3275911, %v1617_v23  ;;  %v1645_v29 = vsub.f32 0.0, %v1617_v23  ;;  %v1646_v31 = vmul.f32 %v1644_v26, %v1616_v63 }
 0x970   : > { %2300 = vrcp.f32 %v1620_v24  ;;  %v1621_v25 = vadd.f32 1.0, %v1619_v3  ;;  %v1647_v35 = vmul.f32 %v1645_v29, %v1617_v23  ;;  %v1648_v36 = vmul.f32 1.442695, %v1646_v31 }
 0x972   : > { %2302 = vrcp.f32 %v1621_v25  ;;  %v1650_v40 = vmul.f32 1.442695, %v1647_v35 }
 0x973   : > { %2304 = vpow2.f32 %v1648_v36 }
 0x974   : > { %2306 = vpow2.f32 %v1650_v40 }
 0x97a   : > { %v2301_v27 = vpop.eup %2300 }
 0x97b   : > { %v1626_v32 = vmul.f32 1.0614054, %v2301_v27 }
 0x97c   : > { %v2303_v13 = vpop.eup %2302 }
 0x97d   : > { %v1628_v20 = vadd.f32 -1.4531521, %v1626_v32  ;;  %v1627_v37 = vmul.f32 1.0614054, %v2303_v13  ;;  %v2305_v30 = vpop.eup %2304 }
 0x97e   : > { %v2307_v52 = vpop.eup %2306 }
 0x97f   : > { %v1630_v33 = vmul.f32 %v2301_v27, %v1628_v20  ;;  %v1629_v38 = vadd.f32 -1.4531521, %v1627_v37 }
 0x981   : > { %v1632_v39 = vadd.f32 1.4214138, %v1630_v33  ;;  %v1631_v41 = vmul.f32 %v2303_v13, %v1629_v38 }
 0x983   : > { %v1634_v42 = vmul.f32 %v2301_v27, %v1632_v39  ;;  %v1633_v43 = vadd.f32 1.4214138, %v1631_v41 }
 0x985   : > { %v1636_v44 = vadd.f32 -0.28449672, %v1634_v42  ;;  %v1635_v45 = vmul.f32 %v2303_v13, %v1633_v43 }
 0x987   : > { %v1638_v46 = vmul.f32 %v2301_v27, %v1636_v44  ;;  %v1637_v47 = vadd.f32 -0.28449672, %v1635_v45 }
 0x989   : > { %v1640_v28 = vadd.f32 0.2548296, %v1638_v46  ;;  %v1639_v48 = vmul.f32 %v2303_v13, %v1637_v47 }
 0x98b   : > { %v1642_v49 = vmul.f32 %v2301_v27, %v1640_v28  ;;  %v1641_v50 = vadd.f32 0.2548296, %v1639_v48 }
 0x98d   : > { %v1652_v51 = vmul.f32 %v2305_v30, %v1642_v49  ;;  %v1643_v17 = vmul.f32 %v2303_v13, %v1641_v50 }
 0x98f   : > { %v1654_v53 = vsub.f32 1.0, %v1652_v51  ;;  %v1653_v56 = vmul.f32 %v2307_v52, %v1643_v17 }
 0x991   : > { %v1656_v57 = vmul.f32 %v1654_v53, %v1614_v55  ;;  %v1655_v60 = vsub.f32 1.0, %v1653_v56 }
 0x993   : > { %v1658_v59 = vadd.f32 1.0, %v1656_v57  ;;  %v1657_v61 = vmul.f32 %v1655_v60, %v1615_v58 }
 0x995   : > { %v1659_v1 = vadd.f32 1.0, %v1657_v61  ;;  %v1660_v4 = vmul.f32 %v1658_v59, %v1608_v62 }
 0x997   : > { %v1661_v34 = vmul.f32 %v1659_v1, %v1609_v0 }
 0x999   : > { %v1662_v6 = vpack.c.bf16 %v1661_v34, %v1660_v4 }
 0x99b   : > { %2157 = vmatmul.mubr.msk.bf16.vlgmr.msra.gmra.mrb[36].mxu1 %vm1690_vm9, %v1662_v6 }
 0xa6e   : > { %v1728_v8 = vpop.f32.mrb[36].mxu1 }
 0xa6f   : > { %v1729_v9 = vadd.f32 %v1728_v8, %v1688_v7  ;;  %v2158_v5 = vpop.f32.mrb[37].mxu1 }
 0xa70   : > { %v1731_v12 = vpop.f32.mrb[38].mxu1 }
 0xa71   : > { %v1737_v16 = vmul.f32 0.70710677, %v1729_v9  ;;  %v1732_v18 = vadd.f32 %v1731_v12, %v1688_v7  ;;  %v2159_v19 = vpop.f32.mrb[39].mxu1  ;;  %v1735_v56 = vmul.f32 0.5, %v1729_v9 }
 0xa73   : > { %v1743_v22 = vand.u32 2147483647, %v1737_v16  ;;  %v1738_v63 = vmul.f32 0.70710677, %v1732_v18  ;;  %vm1739_vm10 = vcmp.ge.f32.partialorder %v1737_v16, 0.0  ;;  %v1736_v61 = vmul.f32 0.5, %v1732_v18 }
 0xa74   : > { %v1741_v17 = vsel %vm1739_vm10, 1.0, %v2442_v54 }
 0xa75   : > { %v1745_v2 = vmul.f32 0.3275911, %v1743_v22  ;;  %v1744_v10 = vand.u32 2147483647, %v1738_v63  ;;  %v1771_v24 = vsub.f32 0.0, %v1743_v22  ;;  %vm1740_vm11 = vcmp.ge.f32.partialorder %v1738_v63, 0.0 }
 0xa76   : > { %v1742_v60 = vsel %vm1740_vm11, 1.0, %v2442_v54 }
 0xa77   : > { %v1747_v15 = vadd.f32 1.0, %v1745_v2  ;;  %v1746_v21 = vmul.f32 0.3275911, %v1744_v10  ;;  %v1772_v3 = vsub.f32 0.0, %v1744_v10  ;;  %v1773_v26 = vmul.f32 %v1771_v24, %v1743_v22 }
 0xa79   : > { %2308 = vrcp.f32 %v1747_v15  ;;  %v1748_v23 = vadd.f32 1.0, %v1746_v21  ;;  %v1774_v32 = vmul.f32 %v1772_v3, %v1744_v10  ;;  %v1775_v13 = vmul.f32 1.442695, %v1773_v26 }
 0xa7b   : > { %2310 = vrcp.f32 %v1748_v23  ;;  %v1777_v33 = vmul.f32 1.442695, %v1774_v32 }
 0xa7c   : > { %2312 = vpow2.f32 %v1775_v13 }
 0xa7d   : > { %2314 = vpow2.f32 %v1777_v33 }
 0xa83   : > { %v2309_v25 = vpop.eup %2308 }
 0xa84   : > { %v1753_v29 = vmul.f32 1.0614054, %v2309_v25 }
 0xa85   : > { %v2311_v27 = vpop.eup %2310 }
 0xa86   : > { %v1755_v31 = vadd.f32 -1.4531521, %v1753_v29  ;;  %v1754_v20 = vmul.f32 1.0614054, %v2311_v27  ;;  %v2313_v28 = vpop.eup %2312 }
 0xa87   : > { %v2315_v50 = vpop.eup %2314 }
 0xa88   : > { %v1757_v35 = vmul.f32 %v2309_v25, %v1755_v31  ;;  %v1756_v36 = vadd.f32 -1.4531521, %v1754_v20 }
 0xa8a   : > { %v1759_v37 = vadd.f32 1.4214138, %v1757_v35  ;;  %v1758_v38 = vmul.f32 %v2311_v27, %v1756_v36 }
 0xa8c   : > { %v1761_v39 = vmul.f32 %v2309_v25, %v1759_v37  ;;  %v1760_v40 = vadd.f32 1.4214138, %v1758_v38 }
 0xa8e   : > { %v1763_v41 = vadd.f32 -0.28449672, %v1761_v39  ;;  %v1762_v42 = vmul.f32 %v2311_v27, %v1760_v40 }
 0xa90   : > { %v1765_v43 = vmul.f32 %v2309_v25, %v1763_v41  ;;  %v1764_v44 = vadd.f32 -0.28449672, %v1762_v42 }
 0xa92   : > { %v1767_v45 = vadd.f32 0.2548296, %v1765_v43  ;;  %v1766_v46 = vmul.f32 %v2311_v27, %v1764_v44 }
 0xa94   : > { %v1769_v47 = vmul.f32 %v2309_v25, %v1767_v45  ;;  %v1768_v48 = vadd.f32 0.2548296, %v1766_v46 }
 0xa96   : > { %v1779_v49 = vmul.f32 %v2313_v28, %v1769_v47  ;;  %v1770_v30 = vmul.f32 %v2311_v27, %v1768_v48 }
 0xa98   : > { %v1781_v51 = vsub.f32 1.0, %v1779_v49  ;;  %v1780_v52 = vmul.f32 %v2315_v50, %v1770_v30 }
 0xa9a   : > { %v1783_v53 = vmul.f32 %v1781_v51, %v1741_v17  ;;  %v1782_v55 = vsub.f32 1.0, %v1780_v52 }
 0xa9c   : > { %v1785_v57 = vadd.f32 1.0, %v1783_v53  ;;  %v1784_v58 = vmul.f32 %v1782_v55, %v1742_v60 }
 0xa9e   : > { %v1787_v59 = vmul.f32 %v1785_v57, %v1735_v56  ;;  %v1786_v62 = vadd.f32 1.0, %v1784_v58 }
 0xaa0   : > { %v1789_v0 = vadd.f32 %v1787_v59, %v2821_v11  ;;  %v1788_v1 = vmul.f32 %v1786_v62, %v1736_v61 }
 0xaa2   : > { %1791 = vst.msk [vmem:[#allocation5] sm:$0xff] %vm365_vm1, %v1789_v0  ;;  %v1790_v4 = vadd.f32 %v1788_v1, %v2824_v14 }
 0xaa4   : > { %1792 = vst.msk [vmem:[#allocation5 + $0x8] sm:$0xff] %vm365_vm1, %v1790_v4 }
 0xaa5   : > { %2359 = shalt.err (!%p2356_p1)
}
 0xaa6   : > { %s2360_s12 = scalar_lea.hbm %s2909_s5, 256 }
 0xaa7   : > { %p2361_p2 = scmp.ne.s32.totalorder %s2909_s5, %s2360_s12  ;;  %p2366_p3 = scmp.lt.u32.totalorder %s2360_s12, %s2909_s5 }
 0xaa9   : > { %p2362_p11 = pnand %p2361_p2, %p2857_p9 }
 0xaab   : > { %p2363_p13 = pneg %p2362_p11 }
 0xaad   : > { %p2368_p4 = pnand %p2366_p3, %p2363_p13 }
 0xaaf   : > { %2371 = shalt.err (!%p2368_p4)
}
 0xab0   : > { %s2444_s11 = smov 128  }
 0xab1   : > { %2163 = dma.vmem_to_hbm [thread:$0]  (%p2857_p9), %s1803_s28, 256, %s2909_s5, [#allocation4], %s2444_s11, %s2444_s11, %s2439_s6  }
 0xab2   : > { %2401 = dma.done.wait (%p2857_p9), [#allocation4], 256  }
 0xab3   : > { %2403 = vsyncadd (%p2857_p9), [#allocation4], 4294967040 }
 0xab4 PF: > { %s19_s23 = sadd.s32 1, %s2426_s23   ;;  %s2914_s18 = smov %s2410_s19 }
 0xab5   : > { %p16_p7 = scmp.ge.s32.totalorder %s19_s23, 5   ;;  %s2915_s19 = smov %s2414_s20 }
 0xab6   : > { %s2916_s20 = smov %s2526_s30  ;;  %s2917_s21 = smov %s2422_s22 }
 0xab7   : > { %s2918_s22 = smov %s2920_s25  ;;  %18 = sbr.rel (!%p16_p7) target bundleno = 5 (0x5), region = 97 }
 0xabe   :  { %1818 = vsyncpa [#allocation3], 1 }
 0xabf   :  { %1820 = vsyncpa [#allocation3 + $0x1], 1 }
 0xac0   :  { %1821 = vsyncpa [#allocation4], 1 }
 0xac1   :  { %1823 = vsyncpa [#allocation4 + $0x1], 1 }

</bundles_post_ra>
